<compile_context>
chip_gen: v5e
topology: v5e:2x2
jax: 0.10.0
libtpu: 0.0.40
codegen_flags: <defaults>
</compile_context>

<pallas_src>
import functools

import jax
import jax.numpy as jnp
from jax import lax
from jax.experimental import pallas as pl
from jax.experimental.pallas import tpu as pltpu

LANE = 128


def _round_up(x, m):
    return (x + m - 1) // m * m


# ----------------------------------------------------------------------------
# Pallas kernel.
#   A 3x3 / stride-2 / pad-1 conv is re-expressed exactly as a stride-1 2x2 conv over
#   the space-to-depth(2) input (channel order (row_parity, col_parity, cin)), zero-
#   padded by one s2d row/col at the top/left.  With the padded s2d spatial dims
#   flattened into rows of width Wp, tap (dr, dc) of the 2x2 conv is the contiguous
#   row range [dr*Wp + dc, dr*Wp + dc + band*Wp): a pure view, one MXU matmul per tap,
#   zero copy traffic.  Rows whose column lands in the pad/slack region produce junk
#   outputs that only ever read in-bounds pad/slack data and are discarded in the
#   wrapper; they never affect valid outputs.
# ----------------------------------------------------------------------------
def _conv_s2d_kernel(x_ref, w_ref, b_ref, o_ref, acc_ref, *, wp):
    # x_ref  : [1, 1, (band+2)*Wp, tk]  bf16  flattened padded s2d rows (one band, one K tile)
    # w_ref  : [4, tk, tn]              bf16  tap-major folded weights
    # b_ref  : [1, tn]                  f32
    # o_ref  : [1, 1, band*Wp, tn]      bf16 / f32
    # acc_ref: [band*Wp, tn]            f32 VMEM scratch, resident across the K axis
    kt = pl.program_id(3)

    @pl.when(kt == 0)
    def _init():
        acc_ref[...] = jnp.zeros_like(acc_ref)

    mb = acc_ref.shape[0]
    part = None
    for dr in range(2):
        for dc in range(2):
            tap = x_ref[0, 0, pl.ds(dr * wp + dc, mb), :]        # contiguous view
            d = jnp.dot(tap, w_ref[2 * dr + dc],
                        preferred_element_type=jnp.float32)
            part = d if part is None else part + d
    acc_ref[...] += part

    @pl.when(kt == pl.num_programs(3) - 1)
    def _finalize():
        o_ref[0, 0] = jnp.maximum(acc_ref[...] + b_ref[...], 0.0).astype(o_ref.dtype)


# ----------------------------------------------------------------------------
# Plain-JAX layout glue (one relayout pass per stage; no im2col expansion)
# ----------------------------------------------------------------------------
def _space_to_depth(x, channels_last):
    """-> [B, H/2, W/2, 4*C], channel order (row_parity, col_parity, cin)."""
    if channels_last:
        B, H, W, C = x.shape
        s = x.reshape(B, H // 2, 2, W // 2, 2, C).transpose(0, 1, 3, 2, 4, 5)
    else:  # NCHW (PyTorch input convention): fold the NHWC transpose in here
        B, C, H, W = x.shape
        s = x.reshape(B, C, H // 2, 2, W // 2, 2).transpose(0, 2, 4, 3, 5, 1)
    return s.reshape(B, H // 2, W // 2, 4 * C)


def _build_banded_input(x, *, channels_last, band, wp):
    """-> [B, n_bands, (band+2)*wp, 4*Cin] bf16: flattened, padded, row-banded s2d.

    Row 0 / column 0 hold the conv zero padding; columns [wo+1, wp) and the last row
    of each band are slack, read only by the discarded (junk) output columns.
    """
    s = _space_to_depth(x.astype(jnp.bfloat16), channels_last)
    B, ho, wo, k = s.shape
    p = jnp.pad(s, ((0, 0), (1, 1), (1, wp - 1 - wo), (0, 0)))   # [B, ho+2, wp, k]
    # TODO(synk): the top/left zero pad could instead be masked in-kernel; here it fuses
    #   into the same XLA relayout pass as the s2d transpose.
    nb = ho // band
    if nb == 1:
        xb = p[:, None]
    else:
        # TODO(synk): 2 halo rows per band are duplicated by this gather; for very tall
        #   images switch to pl.ANY + manual halo DMA instead.
        xb = jnp.stack([p[:, i * band:i * band + band + 2] for i in range(nb)], axis=1)
    return xb.reshape(B, nb, (band + 2) * wp, k)


def _fold_weights(w_oihw, cout_p):
    """[Cout, Cin, 3, 3] OIHW -> [4, 4*Cin, cout_p] tap-major 2x2 weights for the
    space-to-depth formulation (Cout zero-padded to a lane multiple)."""
    cout, cin, kh, kw = w_oihw.shape
    assert (kh, kw) == (3, 3)
    w = w_oihw
    if cout_p > cout:
        w = jnp.pad(w, ((0, cout_p - cout), (0, 0), (0, 0), (0, 0)))
    # 3x3/stride-2 tap (ki,kj) lands at s2d tap (dr,dc), block parity (pi,pj):
    #   k==0 -> (d=0,p=1);  k in {1,2} -> (d=1,p=k-1);  (d,p)=(0,0) has no source -> 0.
    w4 = jnp.zeros((2, 2, 2, 2, cin, cout_p), w.dtype)
    for ki in range(3):
        dr, pi = (0, 1) if ki == 0 else (1, ki - 1)
        for kj in range(3):
            dc, pj = (0, 1) if kj == 0 else (1, kj - 1)
            w4 = w4.at[dr, dc, pi, pj].set(jnp.transpose(w[:, :, ki, kj]))
    return w4.reshape(4, 4 * cin, cout_p)


# ----------------------------------------------------------------------------
# Per-generation / per-shape tiling heuristics
# ----------------------------------------------------------------------------
def _pick_tn(cout_p):
    """Output-channel tile: 256 on 256-wide-MXU generations (v6e/v7x) when it divides
    Cout, else 128 (native width on v5e; always divides cout_p)."""
    try:
        kind = jax.devices()[0].device_kind.lower()
    except Exception:
        kind = ""
    prefer = 256 if ("v6" in kind or "v7" in kind) else 128
    return prefer if cout_p % prefer == 0 else 128


def _pick_tk(k):
    """Contraction tile (innermost grid axis)."""
    for t in (256, 128):
        if k % t == 0:
            return t
    return k


def _stage_vmem_bytes(band, wp, tk, tn, out_itemsize):
    rb, mb = (band + 2) * wp, band * wp
    return (2 * rb * tk * 2              # double-buffered bf16 input band
            + 2 * 4 * tk * tn * 2        # double-buffered bf16 weight tile
            + 2 * tn * 4                 # bias
            + 2 * mb * tn * out_itemsize # double-buffered output band
            + mb * tn * 4)               # f32 accumulator scratch


def _pick_band(ho, wp, tk, tn, out_itemsize, budget=20 << 20, max_rows=4096):
    """Largest divisor of ho whose per-step working set fits the budget (v7x-safe)
    with a bounded accumulator; degrades to band=1 for very large images."""
    best = 1
    for band in range(1, ho + 1):
        if ho % band:
            continue
        if band * wp > max_rows:
            break
        if _stage_vmem_bytes(band, wp, tk, tn, out_itemsize) <= budget:
            best = band
    return best


# ----------------------------------------------------------------------------
# One backbone stage: 3x3 / stride-2 / pad-1 conv + bias + ReLU via Pallas
# ----------------------------------------------------------------------------
def _conv3x3_s2_relu(x, w4, b2, *, channels_last, out_dtype):
    """x: [B,H,W,Cin] (channels_last) or [B,Cin,H,W].  Returns [B, H/2, W/2, cout_p]."""
    n_taps, K, cout_p = w4.shape
    assert n_taps == 4
    cin = K // 4
    if channels_last:
        B, H, W, cx = x.shape
    else:
        B, cx, H, W = x.shape
    assert cx == cin and H % 2 == 0 and W % 2 == 0  # TODO(synk): pad odd spatial sizes
    ho, wo = H // 2, W // 2

    wp = _round_up(wo + 1, 8)          # padded row width (left pad + lane-friendly slack)
    tn = _pick_tn(cout_p)
    tk = _pick_tk(K)
    itemsize = jnp.dtype(out_dtype).itemsize
    band = _pick_band(ho, wp, tk, tn, itemsize)
    nb, mb, rb = ho // band, band * wp, (band + 2) * wp

    xb = _build_banded_input(x, channels_last=channels_last, band=band, wp=wp)

    est = _stage_vmem_bytes(band, wp, tk, tn, itemsize)
    out = pl.pallas_call(
        functools.partial(_conv_s2d_kernel, wp=wp),
        out_shape=jax.ShapeDtypeStruct((B, nb, mb, cout_p), out_dtype),
        grid_spec=pltpu.PrefetchScalarGridSpec(
            num_scalar_prefetch=0,
            grid=(B, nb, cout_p // tn, K // tk),
            in_specs=[
                pl.BlockSpec((1, 1, rb, tk), lambda b, r, n, k: (b, r, 0, k)),
                # TODO(synk): pipeline_mode=pl.Buffered(1) on the two grid-invariant
                #   specs below once single-buffering is safe on the target JAX rev.
                pl.BlockSpec((4, tk, tn), lambda b, r, n, k: (0, k, n)),
                pl.BlockSpec((1, tn), lambda b, r, n, k: (0, n)),
            ],
            out_specs=pl.BlockSpec((1, 1, mb, tn), lambda b, r, n, k: (b, r, 0, n)),
            scratch_shapes=[pltpu.VMEM((mb, tn), jnp.float32)],
        ),
        compiler_params=pltpu.CompilerParams(
            dimension_semantics=("parallel", "parallel", "parallel", "arbitrary"),
            vmem_limit_bytes=int(max(2 * est + (2 << 20), 16 << 20)),
        ),
    )(xb, w4, b2)

    # [B, nb, band*wp, cout_p] -> [B, ho, wp, cout_p] is a pure (bitcast) reshape;
    # dropping the slack columns fuses into the consumer (next s2d / final reshape).
    return out.reshape(B, ho, wp, cout_p)[:, :, :wo, :]


# ----------------------------------------------------------------------------
# VisualExtractor forward (synthetic 2-stage backbone, 128-wide feature maps)
# ----------------------------------------------------------------------------
def init_params(key, in_ch=3, feat1=128, feat2=128, k=3):
    k1, k2, k3, k4 = jax.random.split(key, 4)
    s1 = 1.0 / jnp.sqrt(in_ch * k * k)
    s2 = 1.0 / jnp.sqrt(feat1 * k * k)
    return {
        "w1": jax.random.normal(k1, (feat1, in_ch, k, k), jnp.float32) * s1,
        "b1": jax.random.normal(k2, (feat1,), jnp.float32) * 0.01,
        "w2": jax.random.normal(k3, (feat2, feat1, k, k), jnp.float32) * s2,
        "b2": jax.random.normal(k4, (feat2,), jnp.float32) * 0.01,
    }


def _prepare_stage(w_oihw, bias):
    """One-time weight prep, hoisted out of the jitted per-forward path."""
    cout = w_oihw.shape[0]
    cout_p = _round_up(cout, LANE)
    w4 = _fold_weights(w_oihw, cout_p).astype(jnp.bfloat16)
    b2 = jnp.zeros((1, cout_p), jnp.float32).at[0, :cout].set(bias.astype(jnp.float32))
    return w4, b2, cout


def make_forward(params):
    """Builds a jitted forward with pre-folded weights closed over as constants."""
    w4_1, b2_1, _ = _prepare_stage(params["w1"], params["b1"])
    w4_2, b2_2, feat2 = _prepare_stage(params["w2"], params["b2"])

    @jax.jit
    def forward(images):
        """images: [B, Cin, H, W] (NCHW).  Returns patch_feats [B, (H/4)*(W/4), feat2],
        matching `patch_feats.reshape(B, C, -1).permute(0, 2, 1)` of the PyTorch module."""
        h1 = _conv3x3_s2_relu(images, w4_1, b2_1,
                              channels_last=False, out_dtype=jnp.bfloat16)
        h2 = _conv3x3_s2_relu(h1, w4_2, b2_2,
                              channels_last=True, out_dtype=jnp.float32)
        B, ho, wo, _ = h2.shape
        # NHWC row-major spatial flatten == reshape(B, C, -1).permute(0, 2, 1) in NCHW
        return h2.reshape(B, ho * wo, -1)[..., :feat2]

    return forward


# ----------------------------------------------------------------------------
# Pure-JAX reference (lax.conv, all-f32) for correctness check
# ----------------------------------------------------------------------------
def _ref_forward(params, images):
    dn = ("NCHW", "OIHW", "NCHW")
    h = images
    for wk, bk in (("w1", "b1"), ("w2", "b2")):
        h = lax.conv_general_dilated(h, params[wk], (2, 2), ((1, 1), (1, 1)),
                                     dimension_numbers=dn)
        h = jax.nn.relu(h + params[bk][None, :, None, None])
    B, C, Hf, Wf = h.shape
    return h.reshape(B, C, Hf * Wf).transpose(0, 2, 1)


if __name__ == "__main__":
    key = jax.random.PRNGKey(0)
    kp, kx = jax.random.split(key)
    params = init_params(kp)

    # Small NCHW input: batch=2, channels=3, spatial=16x16
    images = jax.random.normal(kx, (2, 3, 16, 16), jnp.float32)

    forward = make_forward(params)
    patch_feats = jax.block_until_ready(forward(images))
    assert patch_feats.shape == (2, 16, 128), patch_feats.shape

    ref = _ref_forward(params, images)
    # bf16 operands + f32 accumulation vs an all-f32 lax.conv reference
    err = float(jnp.max(jnp.abs(patch_feats - ref)))
    assert jnp.allclose(patch_feats, ref, atol=5e-2, rtol=5e-2), err

    print("KERNEL_OK")
</pallas_src>

<mosaic_0001>
module attributes {stable_mosaic.version = 11 : i64} {
  func.func @_conv_s2d_kernel(%arg0: i32, %arg1: i32, %arg2: i32, %arg3: i32, %arg4: memref<1x1x160x12xbf16, #tpu.memory_space<vmem>>, %arg5: memref<4x12x128xbf16, #tpu.memory_space<vmem>>, %arg6: memref<1x128xf32, #tpu.memory_space<vmem>>, %arg7: memref<1x1x128x128xbf16, #tpu.memory_space<vmem>>, %arg8: memref<128x128xf32, #tpu.memory_space<vmem>>) attributes {dimension_semantics = [#tpu.dimension_semantics<parallel>, #tpu.dimension_semantics<parallel>, #tpu.dimension_semantics<parallel>, #tpu.dimension_semantics<arbitrary>], iteration_bounds = array<i64: 2, 1, 1, 1>, scalar_prefetch = 0 : i64, scratch_operands = 1 : i64, tpu.core_type = #tpu.core_type<tc>, window_params = [{transform_indices = @transform_0, window_bounds = array<i64: 1, 1, 160, 12>}, {transform_indices = @transform_1, window_bounds = array<i64: 4, 12, 128>}, {transform_indices = @transform_2, window_bounds = array<i64: 1, 128>}, {transform_indices = @transform_3, window_bounds = array<i64: 1, 1, 128, 128>}]} {
    %c0_i32 = arith.constant 0 : i32
    %0 = arith.cmpi eq, %arg3, %c0_i32 : i32
    %1 = arith.extui %0 : i1 to i32
    %c0_i32_0 = arith.constant 0 : i32
    %2 = arith.cmpi ne, %1, %c0_i32_0 : i32
    scf.if %2 {
      %cst_32 = arith.constant 0.000000e+00 : f32
      %32 = vector.broadcast %cst_32 : f32 to vector<128x128xf32>
      %c0_33 = arith.constant 0 : index
      %c0_34 = arith.constant 0 : index
      %33 = vector.load %arg8[%c0_33, %c0_34] : memref<128x128xf32, #tpu.memory_space<vmem>>, vector<128x128xf32>
      tpu.vector_store %arg8[%c0_33, %c0_34], %32 {strides = array<i32>} : memref<128x128xf32, #tpu.memory_space<vmem>>, vector<128x128xf32>,
    } else {
    }
    %c0 = arith.constant 0 : index
    %c0_1 = arith.constant 0 : index
    %c0_2 = arith.constant 0 : index
    %c0_3 = arith.constant 0 : index
    %3 = vector.load %arg4[%c0, %c0_1, %c0_2, %c0_3] : memref<1x1x160x12xbf16, #tpu.memory_space<vmem>>, vector<1x1x128x12xbf16>
    %4 = vector.shape_cast %3 : vector<1x1x128x12xbf16> to vector<128x12xbf16>
    %c0_4 = arith.constant 0 : index
    %c0_5 = arith.constant 0 : index
    %c0_6 = arith.constant 0 : index
    %5 = vector.load %arg5[%c0_4, %c0_5, %c0_6] : memref<4x12x128xbf16, #tpu.memory_space<vmem>>, vector<1x12x128xbf16>
    %6 = vector.shape_cast %5 : vector<1x12x128xbf16> to vector<12x128xbf16>
    %cst = arith.constant dense<0.000000e+00> : vector<128x128xf32>
    %7 = tpu.matmul %4, %6, %cst {dimension_numbers = #tpu.dot_dimension_numbers<[1], [0], [0], [1], [0, 0, 1, 1], [], []>} : vector<128x12xbf16>, vector<12x128xbf16>, vector<128x128xf32> -> vector<128x128xf32>
    %c0_7 = arith.constant 0 : index
    %c0_8 = arith.constant 0 : index
    %c1 = arith.constant 1 : index
    %c0_9 = arith.constant 0 : index
    %8 = vector.load %arg4[%c0_7, %c0_8, %c1, %c0_9] : memref<1x1x160x12xbf16, #tpu.memory_space<vmem>>, vector<1x1x128x12xbf16>
    %9 = vector.shape_cast %8 : vector<1x1x128x12xbf16> to vector<128x12xbf16>
    %c1_10 = arith.constant 1 : index
    %c0_11 = arith.constant 0 : index
    %c0_12 = arith.constant 0 : index
    %10 = vector.load %arg5[%c1_10, %c0_11, %c0_12] : memref<4x12x128xbf16, #tpu.memory_space<vmem>>, vector<1x12x128xbf16>
    %11 = vector.shape_cast %10 : vector<1x12x128xbf16> to vector<12x128xbf16>
    %cst_13 = arith.constant dense<0.000000e+00> : vector<128x128xf32>
    %12 = tpu.matmul %9, %11, %cst_13 {dimension_numbers = #tpu.dot_dimension_numbers<[1], [0], [0], [1], [0, 0, 1, 1], [], []>} : vector<128x12xbf16>, vector<12x128xbf16>, vector<128x128xf32> -> vector<128x128xf32>
    %13 = arith.addf %7, %12 : vector<128x128xf32>
    %c0_14 = arith.constant 0 : index
    %c0_15 = arith.constant 0 : index
    %c16 = arith.constant 16 : index
    %c0_16 = arith.constant 0 : index
    %14 = vector.load %arg4[%c0_14, %c0_15, %c16, %c0_16] : memref<1x1x160x12xbf16, #tpu.memory_space<vmem>>, vector<1x1x128x12xbf16>
    %15 = vector.shape_cast %14 : vector<1x1x128x12xbf16> to vector<128x12xbf16>
    %c2 = arith.constant 2 : index
    %c0_17 = arith.constant 0 : index
    %c0_18 = arith.constant 0 : index
    %16 = vector.load %arg5[%c2, %c0_17, %c0_18] : memref<4x12x128xbf16, #tpu.memory_space<vmem>>, vector<1x12x128xbf16>
    %17 = vector.shape_cast %16 : vector<1x12x128xbf16> to vector<12x128xbf16>
    %cst_19 = arith.constant dense<0.000000e+00> : vector<128x128xf32>
    %18 = tpu.matmul %15, %17, %cst_19 {dimension_numbers = #tpu.dot_dimension_numbers<[1], [0], [0], [1], [0, 0, 1, 1], [], []>} : vector<128x12xbf16>, vector<12x128xbf16>, vector<128x128xf32> -> vector<128x128xf32>
    %19 = arith.addf %13, %18 : vector<128x128xf32>
    %c0_20 = arith.constant 0 : index
    %c0_21 = arith.constant 0 : index
    %c17 = arith.constant 17 : index
    %c0_22 = arith.constant 0 : index
    %20 = vector.load %arg4[%c0_20, %c0_21, %c17, %c0_22] : memref<1x1x160x12xbf16, #tpu.memory_space<vmem>>, vector<1x1x128x12xbf16>
    %21 = vector.shape_cast %20 : vector<1x1x128x12xbf16> to vector<128x12xbf16>
    %c3 = arith.constant 3 : index
    %c0_23 = arith.constant 0 : index
    %c0_24 = arith.constant 0 : index
    %22 = vector.load %arg5[%c3, %c0_23, %c0_24] : memref<4x12x128xbf16, #tpu.memory_space<vmem>>, vector<1x12x128xbf16>
    %23 = vector.shape_cast %22 : vector<1x12x128xbf16> to vector<12x128xbf16>
    %cst_25 = arith.constant dense<0.000000e+00> : vector<128x128xf32>
    %24 = tpu.matmul %21, %23, %cst_25 {dimension_numbers = #tpu.dot_dimension_numbers<[1], [0], [0], [1], [0, 0, 1, 1], [], []>} : vector<128x12xbf16>, vector<12x128xbf16>, vector<128x128xf32> -> vector<128x128xf32>
    %25 = arith.addf %19, %24 : vector<128x128xf32>
    %c0_26 = arith.constant 0 : index
    %c0_27 = arith.constant 0 : index
    %26 = vector.load %arg8[%c0_26, %c0_27] : memref<128x128xf32, #tpu.memory_space<vmem>>, vector<128x128xf32>
    %27 = arith.addf %26, %25 : vector<128x128xf32>
    %c0_28 = arith.constant 0 : index
    %c0_29 = arith.constant 0 : index
    %28 = vector.load %arg8[%c0_28, %c0_29] : memref<128x128xf32, #tpu.memory_space<vmem>>, vector<128x128xf32>
    tpu.vector_store %arg8[%c0_28, %c0_29], %27 {strides = array<i32>} : memref<128x128xf32, #tpu.memory_space<vmem>>, vector<128x128xf32>,
    %c0_i32_30 = arith.constant 0 : i32
    %29 = arith.cmpi eq, %arg3, %c0_i32_30 : i32
    %30 = arith.extui %29 : i1 to i32
    %c0_i32_31 = arith.constant 0 : i32
    %31 = arith.cmpi ne, %30, %c0_i32_31 : i32
    scf.if %31 {
      %c0_32 = arith.constant 0 : index
      %c0_33 = arith.constant 0 : index
      %32 = vector.load %arg8[%c0_32, %c0_33] : memref<128x128xf32, #tpu.memory_space<vmem>>, vector<128x128xf32>
      %c0_34 = arith.constant 0 : index
      %c0_35 = arith.constant 0 : index
      %33 = vector.load %arg6[%c0_34, %c0_35] : memref<1x128xf32, #tpu.memory_space<vmem>>, vector<1x128xf32>
      %34 = vector.broadcast %33 : vector<1x128xf32> to vector<128x128xf32>
      %35 = arith.addf %32, %34 : vector<128x128xf32>
      %cst_36 = arith.constant 0.000000e+00 : f32
      %36 = vector.broadcast %cst_36 : f32 to vector<128x128xf32>
      %37 = arith.maximumf %35, %36 : vector<128x128xf32>
      %38 = arith.truncf %37 : vector<128x128xf32> to vector<128x128xbf16>
      %c0_37 = arith.constant 0 : index
      %c0_38 = arith.constant 0 : index
      %c0_39 = arith.constant 0 : index
      %c0_40 = arith.constant 0 : index
      %39 = vector.load %arg7[%c0_37, %c0_38, %c0_39, %c0_40] : memref<1x1x128x128xbf16, #tpu.memory_space<vmem>>, vector<1x1x128x128xbf16>
      %40 = vector.shape_cast %39 : vector<1x1x128x128xbf16> to vector<128x128xbf16>
      %41 = vector.shape_cast %38 : vector<128x128xbf16> to vector<1x1x128x128xbf16>
      tpu.vector_store %arg7[%c0_37, %c0_38, %c0_39, %c0_40], %41 {strides = array<i32>} : memref<1x1x128x128xbf16, #tpu.memory_space<vmem>>, vector<1x1x128x128xbf16>,
    } else {
    }
    return
  }
  func.func @transform_0(%arg0: i32, %arg1: i32, %arg2: i32, %arg3: i32) -> (i32, i32, i32, i32) {
    %c0_i32 = arith.constant 0 : i32
    %c0_i32_0 = arith.constant 0 : i32
    return %arg0, %arg1, %c0_i32, %arg3 : i32, i32, i32, i32
  }
  func.func @transform_1(%arg0: i32, %arg1: i32, %arg2: i32, %arg3: i32) -> (i32, i32, i32) {
    %c0_i32 = arith.constant 0 : i32
    %c0_i32_0 = arith.constant 0 : i32
    return %c0_i32, %arg3, %arg2 : i32, i32, i32
  }
  func.func @transform_2(%arg0: i32, %arg1: i32, %arg2: i32, %arg3: i32) -> (i32, i32) {
    %c0_i32 = arith.constant 0 : i32
    %c0_i32_0 = arith.constant 0 : i32
    return %c0_i32, %arg2 : i32, i32
  }
  func.func @transform_3(%arg0: i32, %arg1: i32, %arg2: i32, %arg3: i32) -> (i32, i32, i32, i32) {
    %c0_i32 = arith.constant 0 : i32
    %c0_i32_0 = arith.constant 0 : i32
    return %arg0, %arg1, %c0_i32, %arg2 : i32, i32, i32, i32
  }
}

module attributes {stable_mosaic.version = 11 : i64} {
  func.func @_conv_s2d_kernel(%arg0: i32, %arg1: i32, %arg2: i32, %arg3: i32, %arg4: memref<1x1x48x256xbf16, #tpu.memory_space<vmem>>, %arg5: memref<4x256x128xbf16, #tpu.memory_space<vmem>>, %arg6: memref<1x128xf32, #tpu.memory_space<vmem>>, %arg7: memref<1x1x32x128xf32, #tpu.memory_space<vmem>>, %arg8: memref<32x128xf32, #tpu.memory_space<vmem>>) attributes {dimension_semantics = [#tpu.dimension_semantics<parallel>, #tpu.dimension_semantics<parallel>, #tpu.dimension_semantics<parallel>, #tpu.dimension_semantics<arbitrary>], iteration_bounds = array<i64: 2, 1, 1, 2>, scalar_prefetch = 0 : i64, scratch_operands = 1 : i64, tpu.core_type = #tpu.core_type<tc>, window_params = [{transform_indices = @transform_0, window_bounds = array<i64: 1, 1, 48, 256>}, {transform_indices = @transform_1, window_bounds = array<i64: 4, 256, 128>}, {transform_indices = @transform_2, window_bounds = array<i64: 1, 128>}, {transform_indices = @transform_3, window_bounds = array<i64: 1, 1, 32, 128>}]} {
    %c0_i32 = arith.constant 0 : i32
    %0 = arith.cmpi eq, %arg3, %c0_i32 : i32
    %1 = arith.extui %0 : i1 to i32
    %c0_i32_0 = arith.constant 0 : i32
    %2 = arith.cmpi ne, %1, %c0_i32_0 : i32
    scf.if %2 {
      %cst_31 = arith.constant 0.000000e+00 : f32
      %32 = vector.broadcast %cst_31 : f32 to vector<32x128xf32>
      %c0_32 = arith.constant 0 : index
      %c0_33 = arith.constant 0 : index
      %33 = vector.load %arg8[%c0_32, %c0_33] : memref<32x128xf32, #tpu.memory_space<vmem>>, vector<32x128xf32>
      tpu.vector_store %arg8[%c0_32, %c0_33], %32 {strides = array<i32>} : memref<32x128xf32, #tpu.memory_space<vmem>>, vector<32x128xf32>,
    } else {
    }
    %c0 = arith.constant 0 : index
    %c0_1 = arith.constant 0 : index
    %c0_2 = arith.constant 0 : index
    %c0_3 = arith.constant 0 : index
    %3 = vector.load %arg4[%c0, %c0_1, %c0_2, %c0_3] : memref<1x1x48x256xbf16, #tpu.memory_space<vmem>>, vector<1x1x32x256xbf16>
    %4 = vector.shape_cast %3 : vector<1x1x32x256xbf16> to vector<32x256xbf16>
    %c0_4 = arith.constant 0 : index
    %c0_5 = arith.constant 0 : index
    %c0_6 = arith.constant 0 : index
    %5 = vector.load %arg5[%c0_4, %c0_5, %c0_6] : memref<4x256x128xbf16, #tpu.memory_space<vmem>>, vector<1x256x128xbf16>
    %6 = vector.shape_cast %5 : vector<1x256x128xbf16> to vector<256x128xbf16>
    %cst = arith.constant dense<0.000000e+00> : vector<32x128xf32>
    %7 = tpu.matmul %4, %6, %cst {dimension_numbers = #tpu.dot_dimension_numbers<[1], [0], [0], [1], [0, 0, 1, 1], [], []>} : vector<32x256xbf16>, vector<256x128xbf16>, vector<32x128xf32> -> vector<32x128xf32>
    %c0_7 = arith.constant 0 : index
    %c0_8 = arith.constant 0 : index
    %c1 = arith.constant 1 : index
    %c0_9 = arith.constant 0 : index
    %8 = vector.load %arg4[%c0_7, %c0_8, %c1, %c0_9] : memref<1x1x48x256xbf16, #tpu.memory_space<vmem>>, vector<1x1x32x256xbf16>
    %9 = vector.shape_cast %8 : vector<1x1x32x256xbf16> to vector<32x256xbf16>
    %c1_10 = arith.constant 1 : index
    %c0_11 = arith.constant 0 : index
    %c0_12 = arith.constant 0 : index
    %10 = vector.load %arg5[%c1_10, %c0_11, %c0_12] : memref<4x256x128xbf16, #tpu.memory_space<vmem>>, vector<1x256x128xbf16>
    %11 = vector.shape_cast %10 : vector<1x256x128xbf16> to vector<256x128xbf16>
    %cst_13 = arith.constant dense<0.000000e+00> : vector<32x128xf32>
    %12 = tpu.matmul %9, %11, %cst_13 {dimension_numbers = #tpu.dot_dimension_numbers<[1], [0], [0], [1], [0, 0, 1, 1], [], []>} : vector<32x256xbf16>, vector<256x128xbf16>, vector<32x128xf32> -> vector<32x128xf32>
    %13 = arith.addf %7, %12 : vector<32x128xf32>
    %c0_14 = arith.constant 0 : index
    %c0_15 = arith.constant 0 : index
    %c8 = arith.constant 8 : index
    %c0_16 = arith.constant 0 : index
    %14 = vector.load %arg4[%c0_14, %c0_15, %c8, %c0_16] : memref<1x1x48x256xbf16, #tpu.memory_space<vmem>>, vector<1x1x32x256xbf16>
    %15 = vector.shape_cast %14 : vector<1x1x32x256xbf16> to vector<32x256xbf16>
    %c2 = arith.constant 2 : index
    %c0_17 = arith.constant 0 : index
    %c0_18 = arith.constant 0 : index
    %16 = vector.load %arg5[%c2, %c0_17, %c0_18] : memref<4x256x128xbf16, #tpu.memory_space<vmem>>, vector<1x256x128xbf16>
    %17 = vector.shape_cast %16 : vector<1x256x128xbf16> to vector<256x128xbf16>
    %cst_19 = arith.constant dense<0.000000e+00> : vector<32x128xf32>
    %18 = tpu.matmul %15, %17, %cst_19 {dimension_numbers = #tpu.dot_dimension_numbers<[1], [0], [0], [1], [0, 0, 1, 1], [], []>} : vector<32x256xbf16>, vector<256x128xbf16>, vector<32x128xf32> -> vector<32x128xf32>
    %19 = arith.addf %13, %18 : vector<32x128xf32>
    %c0_20 = arith.constant 0 : index
    %c0_21 = arith.constant 0 : index
    %c9 = arith.constant 9 : index
    %c0_22 = arith.constant 0 : index
    %20 = vector.load %arg4[%c0_20, %c0_21, %c9, %c0_22] : memref<1x1x48x256xbf16, #tpu.memory_space<vmem>>, vector<1x1x32x256xbf16>
    %21 = vector.shape_cast %20 : vector<1x1x32x256xbf16> to vector<32x256xbf16>
    %c3 = arith.constant 3 : index
    %c0_23 = arith.constant 0 : index
    %c0_24 = arith.constant 0 : index
    %22 = vector.load %arg5[%c3, %c0_23, %c0_24] : memref<4x256x128xbf16, #tpu.memory_space<vmem>>, vector<1x256x128xbf16>
    %23 = vector.shape_cast %22 : vector<1x256x128xbf16> to vector<256x128xbf16>
    %cst_25 = arith.constant dense<0.000000e+00> : vector<32x128xf32>
    %24 = tpu.matmul %21, %23, %cst_25 {dimension_numbers = #tpu.dot_dimension_numbers<[1], [0], [0], [1], [0, 0, 1, 1], [], []>} : vector<32x256xbf16>, vector<256x128xbf16>, vector<32x128xf32> -> vector<32x128xf32>
    %25 = arith.addf %19, %24 : vector<32x128xf32>
    %c0_26 = arith.constant 0 : index
    %c0_27 = arith.constant 0 : index
    %26 = vector.load %arg8[%c0_26, %c0_27] : memref<32x128xf32, #tpu.memory_space<vmem>>, vector<32x128xf32>
    %27 = arith.addf %26, %25 : vector<32x128xf32>
    %c0_28 = arith.constant 0 : index
    %c0_29 = arith.constant 0 : index
    %28 = vector.load %arg8[%c0_28, %c0_29] : memref<32x128xf32, #tpu.memory_space<vmem>>, vector<32x128xf32>
    tpu.vector_store %arg8[%c0_28, %c0_29], %27 {strides = array<i32>} : memref<32x128xf32, #tpu.memory_space<vmem>>, vector<32x128xf32>,
    %c1_i32 = arith.constant 1 : i32
    %29 = arith.cmpi eq, %arg3, %c1_i32 : i32
    %30 = arith.extui %29 : i1 to i32
    %c0_i32_30 = arith.constant 0 : i32
    %31 = arith.cmpi ne, %30, %c0_i32_30 : i32
    scf.if %31 {
      %c0_31 = arith.constant 0 : index
      %c0_32 = arith.constant 0 : index
      %32 = vector.load %arg8[%c0_31, %c0_32] : memref<32x128xf32, #tpu.memory_space<vmem>>, vector<32x128xf32>
      %c0_33 = arith.constant 0 : index
      %c0_34 = arith.constant 0 : index
      %33 = vector.load %arg6[%c0_33, %c0_34] : memref<1x128xf32, #tpu.memory_space<vmem>>, vector<1x128xf32>
      %34 = vector.broadcast %33 : vector<1x128xf32> to vector<32x128xf32>
      %35 = arith.addf %32, %34 : vector<32x128xf32>
      %cst_35 = arith.constant 0.000000e+00 : f32
      %36 = vector.broadcast %cst_35 : f32 to vector<32x128xf32>
      %37 = arith.maximumf %35, %36 : vector<32x128xf32>
      %c0_36 = arith.constant 0 : index
      %c0_37 = arith.constant 0 : index
      %c0_38 = arith.constant 0 : index
      %c0_39 = arith.constant 0 : index
      %38 = vector.load %arg7[%c0_36, %c0_37, %c0_38, %c0_39] : memref<1x1x32x128xf32, #tpu.memory_space<vmem>>, vector<1x1x32x128xf32>
      %39 = vector.shape_cast %38 : vector<1x1x32x128xf32> to vector<32x128xf32>
      %40 = vector.shape_cast %37 : vector<32x128xf32> to vector<1x1x32x128xf32>
      tpu.vector_store %arg7[%c0_36, %c0_37, %c0_38, %c0_39], %40 {strides = array<i32>} : memref<1x1x32x128xf32, #tpu.memory_space<vmem>>, vector<1x1x32x128xf32>,
    } else {
    }
    return
  }
  func.func @transform_0(%arg0: i32, %arg1: i32, %arg2: i32, %arg3: i32) -> (i32, i32, i32, i32) {
    %c0_i32 = arith.constant 0 : i32
    %c0_i32_0 = arith.constant 0 : i32
    return %arg0, %arg1, %c0_i32, %arg3 : i32, i32, i32, i32
  }
  func.func @transform_1(%arg0: i32, %arg1: i32, %arg2: i32, %arg3: i32) -> (i32, i32, i32) {
    %c0_i32 = arith.constant 0 : i32
    %c0_i32_0 = arith.constant 0 : i32
    return %c0_i32, %arg3, %arg2 : i32, i32, i32
  }
  func.func @transform_2(%arg0: i32, %arg1: i32, %arg2: i32, %arg3: i32) -> (i32, i32) {
    %c0_i32 = arith.constant 0 : i32
    %c0_i32_0 = arith.constant 0 : i32
    return %c0_i32, %arg2 : i32, i32
  }
  func.func @transform_3(%arg0: i32, %arg1: i32, %arg2: i32, %arg3: i32) -> (i32, i32, i32, i32) {
    %c0_i32 = arith.constant 0 : i32
    %c0_i32_0 = arith.constant 0 : i32
    return %arg0, %arg1, %c0_i32, %arg2 : i32, i32, i32, i32
  }
}

</mosaic_0001>

<bundles_post_ra>
// kernel: forward.2
= control target key start
LH: loop header
LB: loop body
LE: loop exit
PB: predicated region body
PF: predicated region fallthrough
CT: control target
= control target key end

     0   :  { %s1567_s12 = smov 0   ;;  %s1569_s13 = smov 0   ;;  %s1739_s0 = inlined_call_operand.vmem [shape: bf16[2,1,160,12], index: 0, kind: input, shape index: {}]   ;;  %s1740_s1 = inlined_call_operand.vmem [shape: bf16[4,12,128], index: 1, kind: input, shape index: {}]   ;;  %s1741_s2 = inlined_call_operand.vmem [shape: f32[1,128], index: 2, kind: input, shape index: {}]   ;;  %s1742_s3 = inlined_call_operand.vmem [shape: bf16[2,1,128,128], index: 3, kind: output, shape index: {}]  }
   0x1   :  { %s1571_s14 = smov 0  }
   0x2 LB: > { %s39_s15 = sadd.s32 1, %s1541_s13  ;;  %p1265_p0 = scmp.ge.s32.totalorder %s1545_s14, 1  ;;  %s1545_s14 = sphi %s1571_s14, %s13_s14   ;;  %s1541_s13 = sphi %s1569_s13, %s1744_s13   ;;  %s1537_s12 = sphi %s1567_s12, %s1743_s12  }
   0x3   : > { %p41_p1 = scmp.ge.s32.totalorder %s39_s15, 2  ;;  %p202_p2 = scmp.lt.s32.totalorder %s1545_s14, 3 }
   0x5   : > { %s1746_s15 = smov (%p41_p1, %s39_s15), 0  ;;  %p203_p3 = pnand %p1265_p0, %p202_p2 }
   0x6   : > { %p251_p4 = scmp.lt.s32.totalorder (!%p203_p3), %s1537_s12, 1 }
   0x7   : > { %206 = sbr.rel (%p203_p3) target bundleno = 289 (0x121), region = 32 }
   0xc   : > { %vm472_vm0 = vcmask 1045504   ;;  %v1363_v0 = vld [vmem:[%s1740_s1 + $0x10] sm:$0xf]  ;;  %v1440_v1 = vld [vmem:[%s1740_s1 + $0x10] sm:$0x30]  ;;  %s1748_s12 = smov (!%p251_p4, %s1537_s12), 1 }
   0xd   : > { %v1364_v2 = vor.u32 %v1440_v1, %v1363_v0  ;;  %v1317_v3 = vld [vmem:[%s1740_s1] sm:$0xf]  ;;  %v1430_v4 = vld [vmem:[%s1740_s1] sm:$0x30]  ;;  %v1305_v6 = vld [vmem:[%s1740_s1 + $0x8] sm:$0xf] }
   0xe   : > { %v1318_v5 = vor.u32 %v1430_v4, %v1317_v3  ;;  %v1431_v7 = vld [vmem:[%s1740_s1 + $0x8] sm:$0x30]  ;;  %v1409_v10 = vld [vmem:[%s1740_s1 + $0x18] sm:$0xf]  ;;  %v1449_v11 = vld [vmem:[%s1740_s1 + $0x18] sm:$0x30] }
   0xf   : > { %v687_v8 = vsel %vm472_vm0, %v1364_v2, 0  ;;  %v1306_v9 = vor.u32 %v1431_v7, %v1305_v6  ;;  %s1497_s5 = smul.u32 80, %s1748_s12  ;;  %v1410_v13 = vor.u32 %v1449_v11, %v1409_v10  ;;  %vm447_vm1 = vcmask 97280   ;;  %s1421_s11 = sshll.u32 %s1748_s12, 6 }
  0x10   : > { %696 = vmatpush.bf16.msra.mxu2 %v687_v8  ;;  %v547_v12 = vsel %vm472_vm0, %v1318_v5, 0  ;;  %vm373_vm2 = vsmask.f32 7424  ;;  %s1706_s18 = scalar_lea.vmem %s1742_s3, %s1421_s11 }
  0x11   : > { %556 = vmatpush.bf16.msra.mxu1 %v547_v12  ;;  %v474_v14 = vsel %vm472_vm0, %v1306_v9, 0  ;;  %s1618_s8 = scalar_lea.vmem %s1739_s0, %s1497_s5  ;;  %v915_v15 = vsel %vm472_vm0, %v1410_v13, 0 }
  0x12   : > { %483 = vmatpush.bf16.msra.mxu0 %v474_v14  ;;  %v1432_v16 = vld [vmem:[%s1618_s8 + $0x8] sm:$0xff]  ;;  %v1422_v17 = vld [vmem:[%s1618_s8] sm:$0xff]  ;;  %924 = vmatpush.bf16.msra.mxu3 %v915_v15  ;;  %v1442_v20 = vld [vmem:[%s1618_s8 + $0x10] sm:$0xff] }
  0x13   : > { %v1423_v18 = vld [vmem:[%s1618_s8 + $0x8] sm:$0xff]  ;;  %1365 = vmatmul.msk.bf16.vlgmr.msra.gmra.mxu2 %vm447_vm1, %v1432_v16  ;;  %v377_v21 = vshll.u32 %v1422_v17, 16  ;;  %v375_v22 = vshrl.u32 %v1422_v17, 16  ;;  %v825_v26 = vshll.u32 %v1442_v20, 16  ;;  %v1424_v35 = vld [vmem:[%s1618_s8 + $0x10] sm:$0xff]  ;;  %v1443_v36 = vld [vmem:[%s1618_s8 + $0x18] sm:$0xff] }
  0x14   : > { %v1441_v19 = vld [vmem:[%s1618_s8 + $0x8] sm:$0xff]  ;;  %1319 = vmatmul.msk.bf16.vlgmr.msra.gmra.mxu1 %vm447_vm1, %v1422_v17  ;;  %v382_v23 = vshll.u32 %v1423_v18, 16  ;;  %v1433_v37 = vld [vmem:[%s1618_s8 + $0x10] sm:$0xff]  ;;  %v386_v38 = vshrl.u32 %v1423_v18, 16  ;;  %v390_v39 = vshll.u32 %v1424_v35, 16  ;;  %v829_v40 = vshrl.u32 %v1442_v20, 16 }
  0x15   : > { %v818_v24 = vshrl.u32 %v1441_v19, 16  ;;  %v820_v25 = vshll.u32 %v1441_v19, 16  ;;  %v379_v27 = vrot.slane %v377_v21, 1  ;;  %v827_v30 = vrot.slane %v825_v26, 1  ;;  %v1425_v48 = vld [vmem:[%s1618_s8 + $0x18] sm:$0xff]  ;;  %v1444_v49 = vld [vmem:[%s1618_s8 + $0x20] sm:$0xff] }
  0x16   : > { %v384_v28 = vrot.slane %v382_v23, 1  ;;  %v833_v41 = vshll.u32 %v1443_v36, 16  ;;  %v392_v43 = vrot.slane %v390_v39, 1  ;;  %v1434_v50 = vld [vmem:[%s1618_s8 + $0x18] sm:$0xff]  ;;  %v394_v51 = vshrl.u32 %v1424_v35, 16  ;;  %v1426_v61 = vld [vmem:[%s1618_s8 + $0x20] sm:$0xff] }
  0x17   : > { %v822_v29 = vrot.slane %v820_v25, 1  ;;  %v380_v31 = vor.u32 %v379_v27, %v375_v22  ;;  %v831_v44 = vor.u32 %v829_v40, %v827_v30  ;;  %v398_v52 = vshll.u32 %v1425_v48, 16  ;;  %v1445_v62 = vld [vmem:[%s1618_s8 + $0x28] sm:$0xff]  ;;  %v1435_v63 = vld [vmem:[%s1618_s8 + $0x20] sm:$0xff]  ;;  %v1446_v11 = vld [vmem:[%s1618_s8 + $0x30] sm:$0xff] }
  0x18   : > { %v388_v42 = vor.u32 %v386_v38, %v384_v28  ;;  %v835_v45 = vrot.slane %v833_v41, 1  ;;  %v837_v53 = vshrl.u32 %v1443_v36, 16  ;;  %v841_v54 = vshll.u32 %v1444_v49, 16  ;;  %v1427_v10 = vld [vmem:[%s1618_s8 + $0x28] sm:$0xff]  ;;  %v1428_v23 = vld [vmem:[%s1618_s8 + $0x30] sm:$0xff]  ;;  %v1429_v36 = vld [vmem:[%s1618_s8 + $0x38] sm:$0xff] }
  0x19   : > { %v823_v32 = vor.u32 %v822_v29, %v818_v24  ;;  %v385_v33 = vsel %vm373_vm2, %v380_v31, %v384_v28  ;;  %v396_v55 = vor.u32 %v394_v51, %v392_v43  ;;  %v400_v56 = vrot.slane %v398_v52, 1  ;;  %v1436_v12 = vld [vmem:[%s1618_s8 + $0x28] sm:$0xff]  ;;  %v1447_v24 = vld [vmem:[%s1618_s8 + $0x38] sm:$0xff]  ;;  %v1437_v25 = vld [vmem:[%s1618_s8 + $0x30] sm:$0xff] }
  0x1a   : > { %1307 = vmatmul.msk.bf16.vlgmr.msra.gmra.mxu0 %vm447_vm1, %v385_v33  ;;  %v393_v46 = vsel %vm373_vm2, %v388_v42, %v392_v43  ;;  %v836_v47 = vsel %vm373_vm2, %v831_v44, %v835_v45  ;;  %v839_v57 = vor.u32 %v837_v53, %v835_v45  ;;  %v843_v58 = vrot.slane %v841_v54, 1  ;;  %v1438_v38 = vld [vmem:[%s1618_s8 + $0x38] sm:$0xff] }
  0x1b   : > { %v828_v34 = vsel %vm373_vm2, %v823_v32, %v827_v30  ;;  %v401_v59 = vsel %vm373_vm2, %v396_v55, %v400_v56  ;;  %v402_v0 = vshrl.u32 %v1425_v48, 16  ;;  %v406_v1 = vshll.u32 %v1426_v61, 16  ;;  %v1439_v55 = vld [vmem:[%s1618_s8 + $0x40] sm:$0xff] }
  0x1c   : > { %1411 = vmatmul.msk.bf16.vlgmr.msra.gmra.mxu3 %vm447_vm1, %v828_v34  ;;  %v844_v60 = vsel %vm373_vm2, %v839_v57, %v843_v58  ;;  %v845_v2 = vshrl.u32 %v1444_v49, 16  ;;  %v849_v3 = vshll.u32 %v1445_v62, 16  ;;  %v410_v13 = vshrl.u32 %v1426_v61, 16 }
  0x1d   : > { %v404_v4 = vor.u32 %v402_v0, %v400_v56  ;;  %v408_v5 = vrot.slane %v406_v1, 1  ;;  %v414_v14 = vshll.u32 %v1427_v10, 16  ;;  %v853_v15 = vshrl.u32 %v1445_v62, 16 }
  0x1e   : > { %v847_v6 = vor.u32 %v845_v2, %v843_v58  ;;  %v851_v7 = vrot.slane %v849_v3, 1  ;;  %v857_v16 = vshll.u32 %v1446_v11, 16  ;;  %v418_v26 = vshrl.u32 %v1427_v10, 16 }
  0x1f   : > { %v409_v8 = vsel %vm373_vm2, %v404_v4, %v408_v5  ;;  %v412_v17 = vor.u32 %v410_v13, %v408_v5  ;;  %v422_v27 = vshll.u32 %v1428_v23, 16  ;;  %v861_v28 = vshrl.u32 %v1446_v11, 16 }
  0x20   : > { %v852_v9 = vsel %vm373_vm2, %v847_v6, %v851_v7  ;;  %v855_v19 = vor.u32 %v853_v15, %v851_v7  ;;  %v859_v20 = vrot.slane %v857_v16, 1  ;;  %v865_v29 = vshll.u32 %v1447_v24, 16 }
  0x21   : > { %v424_v31 = vrot.slane %v422_v27, 1  ;;  %v426_v39 = vshrl.u32 %v1428_v23, 16  ;;  %v430_v40 = vshll.u32 %v1429_v36, 16  ;;  %v869_v41 = vshrl.u32 %v1447_v24, 16 }
  0x22   : > { %v860_v22 = vsel %vm373_vm2, %v855_v19, %v859_v20  ;;  %v863_v32 = vor.u32 %v861_v28, %v859_v20  ;;  %v867_v33 = vrot.slane %v865_v29, 1  ;;  %v434_v56 = vshrl.u32 %v1429_v36, 16 }
  0x23   : > { %1366 = vmatmul.msk.bf16.gmra.mxu2 %vm447_vm1, %v1433_v37  ;;  %v1448_v37 = vld [vmem:[%s1618_s8 + $0x40] sm:$0xff]  ;;  %v428_v43 = vor.u32 %v426_v39, %v424_v31  ;;  %v432_v44 = vrot.slane %v430_v40, 1 }
  0x24   : > { %1320 = vmatmul.msk.bf16.gmra.mxu1 %vm447_vm1, %v1423_v18  ;;  %v416_v18 = vrot.slane %v414_v14, 1  ;;  %v873_v42 = vshll.u32 %v1448_v37, 16  ;;  %v871_v45 = vor.u32 %v869_v41, %v867_v33  ;;  %v877_v58 = vshrl.u32 %v1448_v37, 16  ;;  %v1698_v14 = vld [vmem:[%s1741_s2] ss:$0 sm:$0xff] }
  0x25   : > { %v433_v49 = vsel %vm373_vm2, %v428_v43, %v432_v44 }
  0x26   : > { %v417_v21 = vsel %vm373_vm2, %v412_v17, %v416_v18  ;;  %v420_v30 = vor.u32 %v418_v26, %v416_v18 }
  0x28   : > { %v425_v34 = vsel %vm373_vm2, %v420_v30, %v424_v31 }
  0x2a   : > { %1308 = vmatmul.msk.bf16.gmra.mxu0 %vm447_vm1, %v393_v46  ;;  %v875_v46 = vrot.slane %v873_v42, 1 }
  0x2c   : > { %1412 = vmatmul.msk.bf16.gmra.mxu3 %vm447_vm1, %v836_v47  ;;  %v326_v47 = vld [vmem:[%s1618_s8 + $0x40] sm:$0x1]  ;;  %v876_v51 = vsel %vm373_vm2, %v871_v45, %v875_v46  ;;  %v879_v62 = vor.u32 %v877_v58, %v875_v46 }
  0x33   : > { %1367 = vmatmul.msk.bf16.gmra.mxu2 %vm447_vm1, %v1434_v50  ;;  %v363_v50 = vunpack.c.l.b16 %v326_v47 }
  0x34   : > { %1321 = vmatmul.msk.bf16.gmra.mxu1 %vm447_vm1, %v1424_v35  ;;  %v868_v35 = vsel %vm373_vm2, %v863_v32, %v867_v33 }
  0x35   : > { %v372_v53 = vpack.c.b16 %v363_v50, %v363_v50 }
  0x37   : > { %v438_v57 = vshll.u32 %v372_v53, 16 }
  0x3a   : > { %1309 = vmatmul.msk.bf16.gmra.mxu0 %vm447_vm1, %v401_v59 }
  0x3c   : > { %1413 = vmatmul.msk.bf16.gmra.mxu3 %vm447_vm1, %v844_v60  ;;  %v436_v60 = vor.u32 %v434_v56, %v432_v44 }
  0x43   : > { %1368 = vmatmul.msk.bf16.gmra.mxu2 %vm447_vm1, %v1435_v63 }
  0x44   : > { %1322 = vmatmul.msk.bf16.gmra.mxu1 %vm447_vm1, %v1425_v48  ;;  %v770_v48 = vld [vmem:[%s1618_s8 + $0x48] sm:$0x1] }
  0x45   : > { %v807_v52 = vunpack.c.l.b16 %v770_v48 }
  0x47   : > { %v816_v54 = vpack.c.b16 %v807_v52, %v807_v52 }
  0x49   : > { %v881_v59 = vshll.u32 %v816_v54, 16 }
  0x4a   : > { %1310 = vmatmul.msk.bf16.gmra.mxu0 %vm447_vm1, %v409_v8 }
  0x4b   : > { %v883_v63 = vrot.slane %v881_v59, 1 }
  0x4c   : > { %1414 = vmatmul.msk.bf16.gmra.mxu3 %vm447_vm1, %v852_v9 }
  0x4d   : > { %v884_v1 = vsel %vm373_vm2, %v879_v62, %v883_v63 }
  0x53   : > { %1369 = vmatmul.msk.bf16.gmra.mxu2 %vm447_vm1, %v1436_v12 }
  0x54   : > { %1323 = vmatmul.msk.bf16.gmra.mxu1 %vm447_vm1, %v1426_v61  ;;  %v440_v61 = vrot.slane %v438_v57, 1 }
  0x56   : > { %v441_v0 = vsel %vm373_vm2, %v436_v60, %v440_v61 }
  0x5a   : > { %1311 = vmatmul.msk.bf16.gmra.mxu0 %vm447_vm1, %v417_v21 }
  0x5c   : > { %1415 = vmatmul.msk.bf16.gmra.mxu3 %vm447_vm1, %v860_v22 }
  0x63   : > { %1370 = vmatmul.msk.bf16.gmra.mxu2 %vm447_vm1, %v1437_v25 }
  0x64   : > { %1324 = vmatmul.msk.bf16.gmra.mxu1 %vm447_vm1, %v1427_v10 }
  0x6a   : > { %1312 = vmatmul.msk.bf16.gmra.mxu0 %vm447_vm1, %v425_v34 }
  0x6c   : > { %1416 = vmatmul.msk.bf16.gmra.mxu3 %vm447_vm1, %v868_v35 }
  0x73   : > { %1371 = vmatmul.msk.bf16.gmra.mxu2 %vm447_vm1, %v1438_v38 }
  0x74   : > { %1325 = vmatmul.msk.bf16.gmra.mxu1 %vm447_vm1, %v1428_v23 }
  0x7a   : > { %1313 = vmatmul.msk.bf16.gmra.mxu0 %vm447_vm1, %v433_v49 }
  0x7c   : > { %1417 = vmatmul.msk.bf16.gmra.mxu3 %vm447_vm1, %v876_v51 }
  0x83   : > { %1372 = vmatmul.msk.bf16.gmra.mxu2 %vm447_vm1, %v1439_v55 }
  0x84   : > { %1326 = vmatmul.msk.bf16.gmra.mxu1 %vm447_vm1, %v1429_v36 }
  0x8a   : > { %1314 = vmatmul.msk.bf16.gmra.mxu0 %vm447_vm1, %v441_v0 }
  0x8c   : > { %1418 = vmatmul.msk.bf16.gmra.mxu3 %vm447_vm1, %v884_v1 }
  0x91   : > { %v558_v2 = vpop.f32.mrf.mxu1 }
  0x96   : > { %v698_v3 = vpop.f32.mrf.mxu2 }
  0x97   : > { %v485_v4 = vpop.f32.mrf.mxu0 }
  0x98   : > { %v559_v6 = vadd.f32 %v558_v2, %v485_v4 }
  0x99   : > { %v560_v5 = vpop.f32.mrf.mxu1 }
  0x9a   : > { %v738_v9 = vadd.f32 %v698_v3, %v559_v6 }
  0x9e   : > { %v700_v8 = vpop.f32.mrf.mxu2 }
  0x9f   : > { %v926_v7 = vpop.f32.mrf.mxu3  ;;  %v487_v10 = vpop.f32.mrf.mxu0 }
  0xa0   : > { %v561_v12 = vadd.f32 %v560_v5, %v487_v10  ;;  %v966_v13 = vadd.f32 %v926_v7, %v738_v9 }
  0xa1   : > { %v563_v11 = vpop.f32.mrf.mxu1 }
  0xa2   : > { %v739_v15 = vadd.f32 %v700_v8, %v561_v12  ;;  %v1053_v18 = vadd.f32 %v1698_v14, %v966_v13 }
  0xa4   : > { %v1069_v23 = vmax.f32 %v1053_v18, 0.0 }
  0xa6   : > { %v703_v17 = vpop.f32.mrf.mxu2 }
  0xa7   : > { %v928_v16 = vpop.f32.mrf.mxu3  ;;  %v490_v20 = vpop.f32.mrf.mxu0 }
  0xa8   : > { %v967_v19 = vadd.f32 %v928_v16, %v739_v15  ;;  %v564_v25 = vadd.f32 %v563_v11, %v490_v20 }
  0xa9   : > { %v565_v21 = vpop.f32.mrf.mxu1 }
  0xaa   : > { %v1054_v22 = vadd.f32 %v1698_v14, %v967_v19  ;;  %v740_v29 = vadd.f32 %v703_v17, %v564_v25 }
  0xac   : > { %v1070_v24 = vmax.f32 %v1054_v22, 0.0 }
  0xae   : > { %v1453_v26 = vpack.c.bf16 %v1070_v24, %v1069_v23  ;;  %v705_v28 = vpop.f32.mrf.mxu2 }
  0xaf   : > { %v931_v27 = vpop.f32.mrf.mxu3  ;;  %v492_v30 = vpop.f32.mrf.mxu0 }
  0xb0   : > { %1454 = vst [vmem:[%s1706_s18] sm:$0xff] %v1453_v26   ;;  %v566_v32 = vadd.f32 %v565_v21, %v492_v30  ;;  %v968_v33 = vadd.f32 %v931_v27, %v740_v29 }
  0xb1   : > { %v568_v31 = vpop.f32.mrf.mxu1 }
  0xb2   : > { %v741_v34 = vadd.f32 %v705_v28, %v566_v32  ;;  %v1055_v37 = vadd.f32 %v1698_v14, %v968_v33 }
  0xb4   : > { %v1071_v42 = vmax.f32 %v1055_v37, 0.0 }
  0xb6   : > { %v708_v36 = vpop.f32.mrf.mxu2 }
  0xb7   : > { %v933_v35 = vpop.f32.mrf.mxu3  ;;  %v495_v39 = vpop.f32.mrf.mxu0 }
  0xb8   : > { %v969_v38 = vadd.f32 %v933_v35, %v741_v34  ;;  %v569_v44 = vadd.f32 %v568_v31, %v495_v39 }
  0xb9   : > { %v570_v40 = vpop.f32.mrf.mxu1 }
  0xba   : > { %v1056_v41 = vadd.f32 %v1698_v14, %v969_v38  ;;  %v742_v48 = vadd.f32 %v708_v36, %v569_v44 }
  0xbc   : > { %v1072_v43 = vmax.f32 %v1056_v41, 0.0 }
  0xbe   : > { %v1458_v45 = vpack.c.bf16 %v1072_v43, %v1071_v42  ;;  %v710_v47 = vpop.f32.mrf.mxu2 }
  0xbf   : > { %v936_v46 = vpop.f32.mrf.mxu3  ;;  %v497_v49 = vpop.f32.mrf.mxu0 }
  0xc0   : > { %1490 = vst [vmem:[%s1706_s18 + $0x8] sm:$0xff] %v1458_v45   ;;  %v571_v51 = vadd.f32 %v570_v40, %v497_v49  ;;  %v970_v52 = vadd.f32 %v936_v46, %v742_v48 }
  0xc1   : > { %v573_v50 = vpop.f32.mrf.mxu1 }
  0xc2   : > { %v743_v53 = vadd.f32 %v710_v47, %v571_v51  ;;  %v1057_v56 = vadd.f32 %v1698_v14, %v970_v52 }
  0xc4   : > { %v1073_v61 = vmax.f32 %v1057_v56, 0.0 }
  0xc6   : > { %v713_v55 = vpop.f32.mrf.mxu2 }
  0xc7   : > { %v938_v54 = vpop.f32.mrf.mxu3  ;;  %v500_v58 = vpop.f32.mrf.mxu0 }
  0xc8   : > { %v971_v57 = vadd.f32 %v938_v54, %v743_v53  ;;  %v574_v63 = vadd.f32 %v573_v50, %v500_v58 }
  0xc9   : > { %v575_v59 = vpop.f32.mrf.mxu1 }
  0xca   : > { %v1058_v60 = vadd.f32 %v1698_v14, %v971_v57  ;;  %v744_v3 = vadd.f32 %v713_v55, %v574_v63 }
  0xcc   : > { %v1074_v62 = vmax.f32 %v1058_v60, 0.0 }
  0xce   : > { %v1463_v0 = vpack.c.bf16 %v1074_v62, %v1073_v61  ;;  %v715_v2 = vpop.f32.mrf.mxu2 }
  0xcf   : > { %v941_v1 = vpop.f32.mrf.mxu3  ;;  %v502_v4 = vpop.f32.mrf.mxu0 }
  0xd0   : > { %1491 = vst [vmem:[%s1706_s18 + $0x10] sm:$0xff] %v1463_v0   ;;  %v576_v6 = vadd.f32 %v575_v59, %v502_v4  ;;  %v972_v7 = vadd.f32 %v941_v1, %v744_v3 }
  0xd1   : > { %v578_v5 = vpop.f32.mrf.mxu1 }
  0xd2   : > { %v745_v8 = vadd.f32 %v715_v2, %v576_v6  ;;  %v1059_v11 = vadd.f32 %v1698_v14, %v972_v7 }
  0xd4   : > { %v1075_v17 = vmax.f32 %v1059_v11, 0.0 }
  0xd6   : > { %v718_v10 = vpop.f32.mrf.mxu2 }
  0xd7   : > { %v943_v9 = vpop.f32.mrf.mxu3  ;;  %v505_v13 = vpop.f32.mrf.mxu0 }
  0xd8   : > { %v973_v12 = vadd.f32 %v943_v9, %v745_v8  ;;  %v579_v19 = vadd.f32 %v578_v5, %v505_v13 }
  0xd9   : > { %v580_v15 = vpop.f32.mrf.mxu1 }
  0xda   : > { %v1060_v16 = vadd.f32 %v1698_v14, %v973_v12  ;;  %v746_v23 = vadd.f32 %v718_v10, %v579_v19 }
  0xdc   : > { %v1076_v18 = vmax.f32 %v1060_v16, 0.0 }
  0xde   : > { %v1468_v20 = vpack.c.bf16 %v1076_v18, %v1075_v17  ;;  %v720_v22 = vpop.f32.mrf.mxu2 }
  0xdf   : > { %v946_v21 = vpop.f32.mrf.mxu3  ;;  %v507_v24 = vpop.f32.mrf.mxu0 }
  0xe0   : > { %1492 = vst [vmem:[%s1706_s18 + $0x18] sm:$0xff] %v1468_v20   ;;  %v581_v26 = vadd.f32 %v580_v15, %v507_v24  ;;  %v974_v27 = vadd.f32 %v946_v21, %v746_v23 }
  0xe1   : > { %v583_v25 = vpop.f32.mrf.mxu1 }
  0xe2   : > { %v747_v28 = vadd.f32 %v720_v22, %v581_v26  ;;  %v1061_v31 = vadd.f32 %v1698_v14, %v974_v27 }
  0xe4   : > { %v1077_v36 = vmax.f32 %v1061_v31, 0.0 }
  0xe6   : > { %v723_v30 = vpop.f32.mrf.mxu2 }
  0xe7   : > { %v948_v29 = vpop.f32.mrf.mxu3  ;;  %v510_v33 = vpop.f32.mrf.mxu0 }
  0xe8   : > { %v975_v32 = vadd.f32 %v948_v29, %v747_v28  ;;  %v584_v38 = vadd.f32 %v583_v25, %v510_v33 }
  0xe9   : > { %v585_v34 = vpop.f32.mrf.mxu1 }
  0xea   : > { %v1062_v35 = vadd.f32 %v1698_v14, %v975_v32  ;;  %v748_v42 = vadd.f32 %v723_v30, %v584_v38 }
  0xec   : > { %v1078_v37 = vmax.f32 %v1062_v35, 0.0 }
  0xee   : > { %v1473_v39 = vpack.c.bf16 %v1078_v37, %v1077_v36  ;;  %v725_v41 = vpop.f32.mrf.mxu2 }
  0xef   : > { %v951_v40 = vpop.f32.mrf.mxu3  ;;  %v512_v43 = vpop.f32.mrf.mxu0 }
  0xf0   : > { %1493 = vst [vmem:[%s1706_s18 + $0x20] sm:$0xff] %v1473_v39   ;;  %v586_v44 = vadd.f32 %v585_v34, %v512_v43  ;;  %v976_v46 = vadd.f32 %v951_v40, %v748_v42 }
  0xf1   : > { %v588_v45 = vpop.f32.mrf.mxu1 }
  0xf2   : > { %v749_v47 = vadd.f32 %v725_v41, %v586_v44  ;;  %v1063_v50 = vadd.f32 %v1698_v14, %v976_v46 }
  0xf4   : > { %v1079_v54 = vmax.f32 %v1063_v50, 0.0 }
  0xf6   : > { %v728_v49 = vpop.f32.mrf.mxu2 }
  0xf7   : > { %v953_v48 = vpop.f32.mrf.mxu3  ;;  %v515_v52 = vpop.f32.mrf.mxu0 }
  0xf8   : > { %v977_v51 = vadd.f32 %v953_v48, %v749_v47  ;;  %v589_v56 = vadd.f32 %v588_v45, %v515_v52 }
  0xf9   : > { %v590_v57 = vpop.f32.mrf.mxu1 }
  0xfa   : > { %v1064_v53 = vadd.f32 %v1698_v14, %v977_v51  ;;  %v750_v60 = vadd.f32 %v728_v49, %v589_v56 }
  0xfc   : > { %v1080_v55 = vmax.f32 %v1064_v53, 0.0 }
  0xfe   : > { %v1478_v58 = vpack.c.bf16 %v1080_v55, %v1079_v54  ;;  %v730_v62 = vpop.f32.mrf.mxu2 }
  0xff   : > { %v956_v59 = vpop.f32.mrf.mxu3  ;;  %v517_v61 = vpop.f32.mrf.mxu0 }
 0x100   : > { %1494 = vst [vmem:[%s1706_s18 + $0x28] sm:$0xff] %v1478_v58   ;;  %v591_v63 = vadd.f32 %v590_v57, %v517_v61  ;;  %v978_v0 = vadd.f32 %v956_v59, %v750_v60 }
 0x101   : > { %v593_v2 = vpop.f32.mrf.mxu1 }
 0x102   : > { %v751_v1 = vadd.f32 %v730_v62, %v591_v63  ;;  %v1065_v4 = vadd.f32 %v1698_v14, %v978_v0 }
 0x104   : > { %v1081_v9 = vmax.f32 %v1065_v4, 0.0 }
 0x106   : > { %v733_v8 = vpop.f32.mrf.mxu2 }
 0x107   : > { %v958_v3 = vpop.f32.mrf.mxu3  ;;  %v520_v6 = vpop.f32.mrf.mxu0 }
 0x108   : > { %v979_v5 = vadd.f32 %v958_v3, %v751_v1  ;;  %v594_v11 = vadd.f32 %v593_v2, %v520_v6 }
 0x109   : > { %v595_v17 = vpop.f32.mrf.mxu1 }
 0x10a   : > { %v1066_v7 = vadd.f32 %v1698_v14, %v979_v5  ;;  %v752_v15 = vadd.f32 %v733_v8, %v594_v11 }
 0x10c   : > { %v1082_v10 = vmax.f32 %v1066_v7, 0.0 }
 0x10e   : > { %v1483_v12 = vpack.c.bf16 %v1082_v10, %v1081_v9  ;;  %v735_v20 = vpop.f32.mrf.mxu2 }
 0x10f   : > { %v961_v13 = vpop.f32.mrf.mxu3  ;;  %v522_v16 = vpop.f32.mrf.mxu0 }
 0x110   : > { %1495 = vst [vmem:[%s1706_s18 + $0x30] sm:$0xff] %v1483_v12   ;;  %v596_v18 = vadd.f32 %v595_v17, %v522_v16  ;;  %v980_v19 = vadd.f32 %v961_v13, %v752_v15 }
 0x112   : > { %v753_v21 = vadd.f32 %v735_v20, %v596_v18  ;;  %v1067_v23 = vadd.f32 %v1698_v14, %v980_v19 }
 0x114   : > { %v1083_v26 = vmax.f32 %v1067_v23, 0.0 }
 0x117   : > { %v963_v22 = vpop.f32.mrf.mxu3 }
 0x118   : > { %v981_v24 = vadd.f32 %v963_v22, %v753_v21 }
 0x11a   : > { %v1068_v25 = vadd.f32 %v1698_v14, %v981_v24 }
 0x11c   : > { %v1084_v27 = vmax.f32 %v1068_v25, 0.0 }
 0x11e   : > { %v1488_v28 = vpack.c.bf16 %v1084_v27, %v1083_v26 }
 0x120   : > { %1496 = vst [vmem:[%s1706_s18 + $0x38] sm:$0xff] %v1488_v28  }
 0x121 PF: > { %s13_s14 = sadd.s32 1, %s1545_s14   ;;  %s1743_s12 = smov %s1541_s13 }
 0x122   : > { %p10_p5 = scmp.ge.s32.totalorder %s13_s14, 4   ;;  %s1744_s13 = smov %s1746_s15 }
 0x124   :  { %12 = sbr.rel (!%p10_p5) target bundleno = 2 (0x2), region = 79 }

// kernel: forward.3
= control target key start
LH: loop header
LB: loop body
LE: loop exit
PB: predicated region body
PF: predicated region fallthrough
CT: control target
= control target key end

     0   :  { %s2518_s12 = smov 0   ;;  %s2520_s13 = smov 0   ;;  %s2937_s0 = inlined_call_operand.vmem [shape: bf16[2,1,48,512], index: 0, kind: input, shape index: {}]   ;;  %s2938_s1 = inlined_call_operand.vmem [shape: bf16[4,512,128], index: 1, kind: input, shape index: {}]   ;;  %s2939_s2 = inlined_call_operand.vmem [shape: f32[1,128], index: 2, kind: input, shape index: {}]   ;;  %s2940_s3 = inlined_call_operand.vmem [shape: f32[2,1,32,128], index: 3, kind: output, shape index: {}]  }
   0x1   :  { %s2522_s14 = smov 0   ;;  %s2524_s15 = smov 0  }
   0x2   :  { %s2526_s16 = smov 0   ;;  %s2528_s17 = smov 0  }
   0x3   :  { %s2530_s18 = smov 0   ;;  %s2532_s19 = smov 0  }
   0x4   :  { %s2534_s20 = smov 0  }
   0x5 LB: > { %s28_s21 = sadd.s32 1, %s2487_s18  ;;  %s39_s22 = sadd.s32 1, %s2491_s19  ;;  %s2495_s20 = sphi %s2534_s20, %s13_s20   ;;  %s2491_s19 = sphi %s2532_s19, %s2950_s19   ;;  %s2487_s18 = sphi %s2530_s18, %s2949_s18   ;;  %s2483_s17 = sphi %s2528_s17, %s2948_s17   ;;  %s2479_s16 = sphi %s2526_s16, %s2947_s16   ;;  %s2475_s15 = sphi %s2524_s15, %s2946_s15   ;;  %s2471_s14 = sphi %s2522_s14, %s2945_s14   ;;  %s2467_s13 = sphi %s2520_s13, %s2944_s13   ;;  %s2463_s12 = sphi %s2518_s12, %s2943_s12  }
   0x6   : > { %p29_p0 = scmp.ge.s32.totalorder %s28_s21, 2  ;;  %p57_p1 = scmp.ne.s32.totalorder %s2475_s15, %s2471_s14 }
   0x7   : > { %p58_p2 = scmp.eq.s32.totalorder %s2495_s20, 0  ;;  %s78_s25 = sadd.s32 1, %s2467_s13 }
   0x8   : > { %s2952_s21 = smov (%p29_p0, %s28_s21), 0  ;;  %s2954_s22 = smov (!%p29_p0, %s39_s22), %s2491_s19 }
   0x9   : > { %s46_s23 = ssub.s32 %s2487_s18, %s2952_s21  ;;  %p2573_p3 = por %p58_p2, %p57_p1 }
   0xa   : > { %p41_p4 = scmp.ge.s32.totalorder %s2954_s22, 2  ;;  %p76_p5 = scmp.eq.s32.totalorder %s46_s23, 0 }
   0xb   : > { %p85_p6 = scmp.ne.s32.totalorder %s2467_s13, %s2463_s12  ;;  %s50_s30 = sadd.s32 1, %s2475_s15 }
   0xc   : > { %s2956_s22 = smov (%p41_p4, %s2954_s22), 0  ;;  %p1896_p9 = scmp.ge.s32.totalorder %s2495_s20, 4 }
   0xd   : > { %s2583_s26 = scalar_select %p76_p5, %s2467_s13, %s78_s25  }
   0xe   : > { %s43_s27 = ssub.s32 %s2491_s19, %s2956_s22  ;;  %p2587_p7 = por %p85_p6, %p58_p2 }
   0xf   : > { %s47_s29 = sor.u32 %s46_s23, %s43_s27  ;;  %173 = sbr.rel (%p1896_p9) target bundleno = 102 (0x66), region = 20 }
  0x10   : > { %p48_p8 = scmp.eq.s32.totalorder %s47_s29, 0 }
  0x12   : > { %s2593_s4 = scalar_select %p48_p8, %s2475_s15, %s50_s30  }
  0x14   : > { %176 = sbr.rel (!%p2573_p3) target bundleno = 34 (0x22), region = 24  ;;  %s178_s5 = sand.u32 (%p2573_p3), 1, %s2475_s15  }
  0x15   : > { %s2348_s6 = smul.u32 (%p2573_p3), 48, %s178_s5  ;;  %s1897_s7 = sshll.u32 (%p2573_p3), %s2487_s18, 1 }
  0x16   : > { %s2349_s8 = smul.u32 (%p2573_p3), 24, %s2491_s19 }
  0x17   : > { %s180_s27 = scalar_lea.vmem (%p2573_p3), [#allocation3], %s2348_s6 }
  0x18   : > { %s185_s9 = sadd.s32 (%p2573_p3), %s2349_s8, %s1897_s7 }
  0x19   : > { %s1898_s10 = sshll.u32 %s185_s9, 2 }
  0x1a   : > { %s187_s25 = scalar_lea.vmem %s2937_s0, %s1898_s10 }
  0x1b   : > { %v226_v0 = vld [vmem:[%s187_s25] sm:$0xff]  ;;  %v228_v1 = vld [vmem:[%s187_s25 + $0x10] sm:$0xff] }
  0x1c   : > { %v230_v2 = vld [vmem:[%s187_s25 + $0x20] sm:$0xff]  ;;  %227 = vst [vmem:[%s180_s27] sm:$0xff] %v226_v0  ;;  %v232_v3 = vld [vmem:[%s187_s25 + $0x30] sm:$0xff] }
  0x1d   : > { %229 = vst [vmem:[%s180_s27 + $0x8] sm:$0xff] %v228_v1  ;;  %v234_v4 = vld [vmem:[%s187_s25 + $0x40] sm:$0xff]  ;;  %v236_v5 = vld [vmem:[%s187_s25 + $0x50] sm:$0xff] }
  0x1e   : > { %231 = vst [vmem:[%s180_s27 + $0x10] sm:$0xff] %v230_v2 }
  0x1f   : > { %233 = vst [vmem:[%s180_s27 + $0x18] sm:$0xff] %v232_v3 }
  0x20   : > { %235 = vst [vmem:[%s180_s27 + $0x20] sm:$0xff] %v234_v4 }
  0x21   : > { %237 = vst [vmem:[%s180_s27 + $0x28] sm:$0xff] %v236_v5 }
  0x22 PF: > { %243 = sbr.rel (!%p2587_p7) target bundleno = 102 (0x66), region = 62  ;;  %s245_s24 = sand.u32 (%p2587_p7), 1, %s2467_s13  }
  0x23   : > { %s2278_s29 = sshll.u32 (%p2587_p7), %s2487_s18, 7  ;;  %s1899_s30 = sshll.u32 (%p2587_p7), %s245_s24, 9 }
  0x24   : > { %s2611_s7 = scalar_lea.vmem (%p2587_p7), %s2938_s1, %s2278_s29  ;;  %s2616_s28 = scalar_lea.vmem (%p2587_p7), [#allocation4], %s1899_s30 }
  0x25   : > { %v268_v6 = vld [vmem:[%s2611_s7] sm:$0xff] (%p2587_p7)   ;;  %v272_v7 = vld [vmem:[%s2611_s7 + $0x8] sm:$0xff] (%p2587_p7)   ;;  %v276_v8 = vld [vmem:[%s2611_s7 + $0x10] sm:$0xff] (%p2587_p7)  }
  0x26   : > { %269 = vst [vmem:[%s2616_s28] sm:$0xff] (%p2587_p7), %v268_v6   ;;  %v280_v9 = vld [vmem:[%s2611_s7 + $0x18] sm:$0xff] (%p2587_p7)   ;;  %v284_v10 = vld [vmem:[%s2611_s7 + $0x20] sm:$0xff] (%p2587_p7)   ;;  %v288_v11 = vld [vmem:[%s2611_s7 + $0x28] sm:$0xff] (%p2587_p7)  }
  0x27   : > { %273 = vst [vmem:[%s2616_s28 + $0x8] sm:$0xff] %v272_v7   ;;  %v292_v12 = vld [vmem:[%s2611_s7 + $0x30] sm:$0xff]   ;;  %v296_v13 = vld [vmem:[%s2611_s7 + $0x38] sm:$0xff]   ;;  %v300_v14 = vld [vmem:[%s2611_s7 + $0x40] sm:$0xff]  }
  0x28   : > { %277 = vst [vmem:[%s2616_s28 + $0x10] sm:$0xff] %v276_v8   ;;  %v304_v15 = vld [vmem:[%s2611_s7 + $0x48] sm:$0xff]   ;;  %v308_v16 = vld [vmem:[%s2611_s7 + $0x50] sm:$0xff]   ;;  %v312_v17 = vld [vmem:[%s2611_s7 + $0x58] sm:$0xff]  }
  0x29   : > { %281 = vst [vmem:[%s2616_s28 + $0x18] sm:$0xff] %v280_v9   ;;  %v316_v18 = vld [vmem:[%s2611_s7 + $0x60] sm:$0xff]   ;;  %v320_v19 = vld [vmem:[%s2611_s7 + $0x68] sm:$0xff]   ;;  %v324_v20 = vld [vmem:[%s2611_s7 + $0x70] sm:$0xff]  }
  0x2a   : > { %285 = vst [vmem:[%s2616_s28 + $0x20] sm:$0xff] %v284_v10   ;;  %v328_v21 = vld [vmem:[%s2611_s7 + $0x78] sm:$0xff]   ;;  %v332_v22 = vld [vmem:[%s2611_s7 + $0x100] sm:$0xff]   ;;  %v336_v23 = vld [vmem:[%s2611_s7 + $0x108] sm:$0xff]  }
  0x2b   : > { %289 = vst [vmem:[%s2616_s28 + $0x28] sm:$0xff] %v288_v11   ;;  %v340_v24 = vld [vmem:[%s2611_s7 + $0x110] sm:$0xff]   ;;  %v344_v25 = vld [vmem:[%s2611_s7 + $0x118] sm:$0xff]   ;;  %v348_v26 = vld [vmem:[%s2611_s7 + $0x120] sm:$0xff]  }
  0x2c   : > { %293 = vst [vmem:[%s2616_s28 + $0x30] sm:$0xff] %v292_v12   ;;  %v352_v27 = vld [vmem:[%s2611_s7 + $0x128] sm:$0xff]   ;;  %v356_v28 = vld [vmem:[%s2611_s7 + $0x130] sm:$0xff]   ;;  %v360_v29 = vld [vmem:[%s2611_s7 + $0x138] sm:$0xff]  }
  0x2d   : > { %297 = vst [vmem:[%s2616_s28 + $0x38] sm:$0xff] %v296_v13   ;;  %v364_v30 = vld [vmem:[%s2611_s7 + $0x140] sm:$0xff]   ;;  %v368_v31 = vld [vmem:[%s2611_s7 + $0x148] sm:$0xff]   ;;  %v372_v32 = vld [vmem:[%s2611_s7 + $0x150] sm:$0xff]  }
  0x2e   : > { %301 = vst [vmem:[%s2616_s28 + $0x40] sm:$0xff] %v300_v14   ;;  %v376_v33 = vld [vmem:[%s2611_s7 + $0x158] sm:$0xff]   ;;  %v380_v34 = vld [vmem:[%s2611_s7 + $0x160] sm:$0xff]   ;;  %v384_v35 = vld [vmem:[%s2611_s7 + $0x168] sm:$0xff]  }
  0x2f   : > { %305 = vst [vmem:[%s2616_s28 + $0x48] sm:$0xff] %v304_v15   ;;  %v388_v36 = vld [vmem:[%s2611_s7 + $0x170] sm:$0xff]   ;;  %v392_v37 = vld [vmem:[%s2611_s7 + $0x178] sm:$0xff]   ;;  %v396_v38 = vld [vmem:[%s2611_s7 + $0x200] sm:$0xff]  }
  0x30   : > { %309 = vst [vmem:[%s2616_s28 + $0x50] sm:$0xff] %v308_v16   ;;  %v400_v39 = vld [vmem:[%s2611_s7 + $0x208] sm:$0xff]   ;;  %v404_v40 = vld [vmem:[%s2611_s7 + $0x210] sm:$0xff]   ;;  %v408_v41 = vld [vmem:[%s2611_s7 + $0x218] sm:$0xff]  }
  0x31   : > { %313 = vst [vmem:[%s2616_s28 + $0x58] sm:$0xff] %v312_v17   ;;  %v412_v42 = vld [vmem:[%s2611_s7 + $0x220] sm:$0xff]   ;;  %v416_v43 = vld [vmem:[%s2611_s7 + $0x228] sm:$0xff]   ;;  %v420_v44 = vld [vmem:[%s2611_s7 + $0x230] sm:$0xff]  }
  0x32   : > { %317 = vst [vmem:[%s2616_s28 + $0x60] sm:$0xff] %v316_v18   ;;  %v424_v45 = vld [vmem:[%s2611_s7 + $0x238] sm:$0xff]   ;;  %v428_v46 = vld [vmem:[%s2611_s7 + $0x240] sm:$0xff]   ;;  %v432_v47 = vld [vmem:[%s2611_s7 + $0x248] sm:$0xff]  }
  0x33   : > { %321 = vst [vmem:[%s2616_s28 + $0x68] sm:$0xff] %v320_v19   ;;  %v436_v48 = vld [vmem:[%s2611_s7 + $0x250] sm:$0xff]   ;;  %v440_v49 = vld [vmem:[%s2611_s7 + $0x258] sm:$0xff]   ;;  %v444_v50 = vld [vmem:[%s2611_s7 + $0x260] sm:$0xff]  }
  0x34   : > { %325 = vst [vmem:[%s2616_s28 + $0x70] sm:$0xff] %v324_v20   ;;  %v448_v51 = vld [vmem:[%s2611_s7 + $0x268] sm:$0xff]   ;;  %v452_v52 = vld [vmem:[%s2611_s7 + $0x270] sm:$0xff]   ;;  %v456_v53 = vld [vmem:[%s2611_s7 + $0x278] sm:$0xff]  }
  0x35   : > { %329 = vst [vmem:[%s2616_s28 + $0x78] sm:$0xff] %v328_v21   ;;  %v460_v54 = vld [vmem:[%s2611_s7 + $0x300] sm:$0xff]   ;;  %v464_v55 = vld [vmem:[%s2611_s7 + $0x308] sm:$0xff]   ;;  %v468_v56 = vld [vmem:[%s2611_s7 + $0x310] sm:$0xff]  }
  0x36   : > { %333 = vst [vmem:[%s2616_s28 + $0x80] sm:$0xff] %v332_v22   ;;  %v472_v57 = vld [vmem:[%s2611_s7 + $0x318] sm:$0xff]   ;;  %v476_v58 = vld [vmem:[%s2611_s7 + $0x320] sm:$0xff]   ;;  %v480_v59 = vld [vmem:[%s2611_s7 + $0x328] sm:$0xff]  }
  0x37   : > { %337 = vst [vmem:[%s2616_s28 + $0x88] sm:$0xff] %v336_v23   ;;  %v484_v60 = vld [vmem:[%s2611_s7 + $0x330] sm:$0xff]   ;;  %v488_v61 = vld [vmem:[%s2611_s7 + $0x338] sm:$0xff]   ;;  %v492_v62 = vld [vmem:[%s2611_s7 + $0x340] sm:$0xff]  }
  0x38   : > { %341 = vst [vmem:[%s2616_s28 + $0x90] sm:$0xff] %v340_v24   ;;  %v496_v63 = vld [vmem:[%s2611_s7 + $0x348] sm:$0xff]   ;;  %v500_v0 = vld [vmem:[%s2611_s7 + $0x350] sm:$0xff]   ;;  %v504_v1 = vld [vmem:[%s2611_s7 + $0x358] sm:$0xff]  }
  0x39   : > { %345 = vst [vmem:[%s2616_s28 + $0x98] sm:$0xff] %v344_v25   ;;  %v508_v2 = vld [vmem:[%s2611_s7 + $0x360] sm:$0xff]   ;;  %v512_v3 = vld [vmem:[%s2611_s7 + $0x368] sm:$0xff]   ;;  %v516_v4 = vld [vmem:[%s2611_s7 + $0x370] sm:$0xff]  }
  0x3a   : > { %349 = vst [vmem:[%s2616_s28 + $0xa0] sm:$0xff] %v348_v26   ;;  %v520_v5 = vld [vmem:[%s2611_s7 + $0x378] sm:$0xff]  }
  0x3b   : > { %353 = vst [vmem:[%s2616_s28 + $0xa8] sm:$0xff] %v352_v27  }
  0x3c   : > { %357 = vst [vmem:[%s2616_s28 + $0xb0] sm:$0xff] %v356_v28  }
  0x3d   : > { %361 = vst [vmem:[%s2616_s28 + $0xb8] sm:$0xff] %v360_v29  }
  0x3e   : > { %365 = vst [vmem:[%s2616_s28 + $0xc0] sm:$0xff] %v364_v30  }
  0x3f   : > { %369 = vst [vmem:[%s2616_s28 + $0xc8] sm:$0xff] %v368_v31  }
  0x40   : > { %373 = vst [vmem:[%s2616_s28 + $0xd0] sm:$0xff] %v372_v32  }
  0x41   : > { %377 = vst [vmem:[%s2616_s28 + $0xd8] sm:$0xff] %v376_v33  }
  0x42   : > { %381 = vst [vmem:[%s2616_s28 + $0xe0] sm:$0xff] %v380_v34  }
  0x43   : > { %385 = vst [vmem:[%s2616_s28 + $0xe8] sm:$0xff] %v384_v35  }
  0x44   : > { %389 = vst [vmem:[%s2616_s28 + $0xf0] sm:$0xff] %v388_v36  }
  0x45   : > { %393 = vst [vmem:[%s2616_s28 + $0xf8] sm:$0xff] %v392_v37  }
  0x46   : > { %397 = vst [vmem:[%s2616_s28 + $0x100] sm:$0xff] %v396_v38  }
  0x47   : > { %401 = vst [vmem:[%s2616_s28 + $0x108] sm:$0xff] %v400_v39  }
  0x48   : > { %405 = vst [vmem:[%s2616_s28 + $0x110] sm:$0xff] %v404_v40  }
  0x49   : > { %409 = vst [vmem:[%s2616_s28 + $0x118] sm:$0xff] %v408_v41  }
  0x4a   : > { %413 = vst [vmem:[%s2616_s28 + $0x120] sm:$0xff] %v412_v42  }
  0x4b   : > { %417 = vst [vmem:[%s2616_s28 + $0x128] sm:$0xff] %v416_v43  }
  0x4c   : > { %421 = vst [vmem:[%s2616_s28 + $0x130] sm:$0xff] %v420_v44  }
  0x4d   : > { %425 = vst [vmem:[%s2616_s28 + $0x138] sm:$0xff] %v424_v45  }
  0x4e   : > { %429 = vst [vmem:[%s2616_s28 + $0x140] sm:$0xff] %v428_v46  }
  0x4f   : > { %433 = vst [vmem:[%s2616_s28 + $0x148] sm:$0xff] %v432_v47  }
  0x50   : > { %437 = vst [vmem:[%s2616_s28 + $0x150] sm:$0xff] %v436_v48  }
  0x51   : > { %441 = vst [vmem:[%s2616_s28 + $0x158] sm:$0xff] %v440_v49  }
  0x52   : > { %445 = vst [vmem:[%s2616_s28 + $0x160] sm:$0xff] %v444_v50  }
  0x53   : > { %449 = vst [vmem:[%s2616_s28 + $0x168] sm:$0xff] %v448_v51  }
  0x54   : > { %453 = vst [vmem:[%s2616_s28 + $0x170] sm:$0xff] %v452_v52  }
  0x55   : > { %457 = vst [vmem:[%s2616_s28 + $0x178] sm:$0xff] %v456_v53  }
  0x56   : > { %461 = vst [vmem:[%s2616_s28 + $0x180] sm:$0xff] %v460_v54  }
  0x57   : > { %465 = vst [vmem:[%s2616_s28 + $0x188] sm:$0xff] %v464_v55  }
  0x58   : > { %469 = vst [vmem:[%s2616_s28 + $0x190] sm:$0xff] %v468_v56  }
  0x59   : > { %473 = vst [vmem:[%s2616_s28 + $0x198] sm:$0xff] %v472_v57  }
  0x5a   : > { %477 = vst [vmem:[%s2616_s28 + $0x1a0] sm:$0xff] %v476_v58  }
  0x5b   : > { %481 = vst [vmem:[%s2616_s28 + $0x1a8] sm:$0xff] %v480_v59  }
  0x5c   : > { %485 = vst [vmem:[%s2616_s28 + $0x1b0] sm:$0xff] %v484_v60  }
  0x5d   : > { %489 = vst [vmem:[%s2616_s28 + $0x1b8] sm:$0xff] %v488_v61  }
  0x5e   : > { %493 = vst [vmem:[%s2616_s28 + $0x1c0] sm:$0xff] %v492_v62  }
  0x5f   : > { %497 = vst [vmem:[%s2616_s28 + $0x1c8] sm:$0xff] %v496_v63  }
  0x60   : > { %501 = vst [vmem:[%s2616_s28 + $0x1d0] sm:$0xff] %v500_v0  }
  0x61   : > { %505 = vst [vmem:[%s2616_s28 + $0x1d8] sm:$0xff] %v504_v1  }
  0x62   : > { %509 = vst [vmem:[%s2616_s28 + $0x1e0] sm:$0xff] %v508_v2  }
  0x63   : > { %513 = vst [vmem:[%s2616_s28 + $0x1e8] sm:$0xff] %v512_v3  }
  0x64   : > { %517 = vst [vmem:[%s2616_s28 + $0x1f0] sm:$0xff] %v516_v4  }
  0x65   : > { %521 = vst [vmem:[%s2616_s28 + $0x1f8] sm:$0xff] %v520_v5  }
  0x66 PF: > { %p1902_p10 = scmp.ge.s32.totalorder %s2495_s20, 1  ;;  %p802_p11 = scmp.lt.s32.totalorder %s2495_s20, 5 }
  0x68   : > { %p803_p12 = pnand %p1902_p10, %p802_p11 }
  0x69   : > { %s809_s8 = sand.u32 (!%p803_p12), 1, %s2471_s14   ;;  %s816_s9 = sand.u32 (!%p803_p12), 1, %s2463_s12  }
  0x6a   : > { %806 = sbr.rel (%p803_p12) target bundleno = 363 (0x16b), region = 103  ;;  %s1903_s11 = sshll.u32 (!%p803_p12), %s816_s9, 9 }
  0x6b   : > { %s2350_s10 = smul.u32 (!%p803_p12), 48, %s809_s8  ;;  %p858_p13 = scmp.lt.s32.totalorder (!%p803_p12), %s2483_s17, 1 }
  0x6c   : > { %s2756_s30 = scalar_lea.vmem (!%p803_p12), [#allocation4], %s1903_s11  ;;  %p1906_p0 = scmp.ne.s32.totalorder (!%p803_p12), %s2479_s16, 0 }
  0x6d   : > { %s2754_s29 = scalar_lea.vmem (!%p803_p12), [#allocation3], %s2350_s10 }
  0x6f   : > { %s2958_s17 = smov (!%p858_p13, %s2483_s17), 1  ;;  %873 = sbr.rel (%p1906_p0) target bundleno = 121 (0x79), region = 115 }
  0x70   : > { %s2279_s23 = sshll.u32 %s2958_s17, 5 }
  0x71   : > { %s2752_s24 = scalar_lea.vmem %s2940_s3, %s2279_s23 }
  0x74   : > { %v2497_v6 = vmov 0.0  }
  0x75   : > { %874 = vst [vmem:[#allocation2 + $0x10] sm:$0xff] %v2497_v6 }
  0x76   : > { %875 = vst [vmem:[#allocation2] sm:$0xff] %v2497_v6 }
  0x77   : > { %876 = vst [vmem:[#allocation2 + $0x18] sm:$0xff] %v2497_v6 }
  0x78   : > { %877 = vst [vmem:[#allocation2 + $0x8] sm:$0xff] %v2497_v6 }
  0x79 PF: > { %v2303_v7 = vld [vmem:[%s2756_s30 + $0xb8] sm:$0xff]  ;;  %v2302_v11 = vld [vmem:[%s2756_s30 + $0xb0] sm:$0xff]  ;;  %v2301_v15 = vld [vmem:[%s2756_s30 + $0xa8] sm:$0xff]  ;;  %vm969_vm0 = vsmask.f32 7424  ;;  %p2275_p1 = scmp.ne.s32.totalorder %s2479_s16, 1 }
  0x7a   : > { %v2311_v8 = vld [vmem:[%s2756_s30 + $0xf8] sm:$0xff]  ;;  %1110 = vmatpush.bf16.msra.mxu0 %v2303_v7  ;;  %v2310_v12 = vld [vmem:[%s2756_s30 + $0xf0] sm:$0xff]  ;;  %v2309_v16 = vld [vmem:[%s2756_s30 + $0xe8] sm:$0xff] }
  0x7b   : > { %v2287_v9 = vld [vmem:[%s2756_s30 + $0x38] sm:$0xff]  ;;  %1129 = vmatpush.bf16.msra.mxu1 %v2311_v8  ;;  %v2286_v13 = vld [vmem:[%s2756_s30 + $0x30] sm:$0xff]  ;;  %v2285_v17 = vld [vmem:[%s2756_s30 + $0x28] sm:$0xff] }
  0x7c   : > { %v2295_v10 = vld [vmem:[%s2756_s30 + $0x78] sm:$0xff]  ;;  %1248 = vmatpush.bf16.msra.mxu2 %v2287_v9  ;;  %v2294_v14 = vld [vmem:[%s2756_s30 + $0x70] sm:$0xff]  ;;  %v2293_v18 = vld [vmem:[%s2756_s30 + $0x68] sm:$0xff] }
  0x7d   : > { %1267 = vmatpush.bf16.msra.mxu3 %v2295_v10  ;;  %v2300_v19 = vld [vmem:[%s2756_s30 + $0xa0] sm:$0xff]  ;;  %v2777_v24 = vld [vmem:[%s2754_s29 + $0x8] sm:$0xff]  ;;  %v2783_v26 = vld [vmem:[%s2754_s29 + $0x18] sm:$0xff] }
  0x7e   : > { %1111 = vmatpush.bf16.msra.mxu0 %v2302_v11  ;;  %v2308_v20 = vld [vmem:[%s2756_s30 + $0xe0] sm:$0xff]  ;;  %v955_v29 = vunpack.c.l.b16 %v2777_v24  ;;  %v956_v30 = vunpack.c.h.b16 %v2777_v24  ;;  %v959_v32 = vunpack.c.l.b16 %v2783_v26  ;;  %v2299_v33 = vld [vmem:[%s2756_s30 + $0x98] sm:$0xff]  ;;  %v960_v37 = vunpack.c.h.b16 %v2783_v26  ;;  %v2298_v42 = vld [vmem:[%s2756_s30 + $0x90] sm:$0xff] }
  0x7f   : > { %1130 = vmatpush.bf16.msra.mxu1 %v2310_v12  ;;  %v2284_v21 = vld [vmem:[%s2756_s30 + $0x20] sm:$0xff]  ;;  %v2307_v34 = vld [vmem:[%s2756_s30 + $0xd8] sm:$0xff]  ;;  %v2306_v43 = vld [vmem:[%s2756_s30 + $0xd0] sm:$0xff] }
  0x80   : > { %1249 = vmatpush.bf16.msra.mxu2 %v2286_v13  ;;  %v2292_v22 = vld [vmem:[%s2756_s30 + $0x60] sm:$0xff]  ;;  %v2283_v39 = vld [vmem:[%s2756_s30 + $0x18] sm:$0xff]  ;;  %v2282_v47 = vld [vmem:[%s2756_s30 + $0x10] sm:$0xff] }
  0x81   : > { %1268 = vmatpush.bf16.msra.mxu3 %v2294_v14  ;;  %v878_v23 = vld [vmem:[%s2754_s29] sm:$0xff]  ;;  %v2780_v25 = vld [vmem:[%s2754_s29 + $0x10] sm:$0xff]  ;;  %v2291_v40 = vld [vmem:[%s2756_s30 + $0x58] sm:$0xff] }
  0x82   : > { %1112 = vmatpush.bf16.msra.mxu0 %v2301_v15  ;;  %v953_v27 = vunpack.c.l.b16 %v878_v23  ;;  %v954_v28 = vunpack.c.h.b16 %v878_v23  ;;  %v957_v31 = vunpack.c.l.b16 %v2780_v25  ;;  %v958_v36 = vunpack.c.h.b16 %v2780_v25  ;;  %v2290_v48 = vld [vmem:[%s2756_s30 + $0x50] sm:$0xff]  ;;  %v2297_v51 = vld [vmem:[%s2756_s30 + $0x88] sm:$0xff]  ;;  %v2296_v59 = vld [vmem:[%s2756_s30 + $0x80] sm:$0xff] }
  0x83   : > { %1131 = vmatpush.bf16.msra.mxu1 %v2309_v16  ;;  %v2305_v52 = vld [vmem:[%s2756_s30 + $0xc8] sm:$0xff]  ;;  %v2304_v60 = vld [vmem:[%s2756_s30 + $0xc0] sm:$0xff]  ;;  %v2339_v4 = vld [vmem:[%s2756_s30 + $0x1b8] sm:$0xff] }
  0x84   : > { %1250 = vmatpush.bf16.msra.mxu2 %v2285_v17  ;;  %v2793_v35 = vpack.c.b16 %v955_v29, %v953_v27  ;;  %v2799_v38 = vpack.c.b16 %v956_v30, %v954_v28  ;;  %v2807_v41 = vpack.c.b16 %v959_v32, %v957_v31  ;;  %v2816_v45 = vpack.c.b16 %v960_v37, %v958_v36  ;;  %v2281_v57 = vld [vmem:[%s2756_s30 + $0x8] sm:$0xff]  ;;  %v2280_v1 = vld [vmem:[%s2756_s30] sm:$0xff]  ;;  %v2347_v5 = vld [vmem:[%s2756_s30 + $0x1f8] sm:$0xff] }
  0x85   : > { %1269 = vmatpush.bf16.msra.mxu3 %v2293_v18  ;;  %v2289_v58 = vld [vmem:[%s2756_s30 + $0x48] sm:$0xff]  ;;  %v2288_v2 = vld [vmem:[%s2756_s30 + $0x40] sm:$0xff]  ;;  %v2319_v10 = vld [vmem:[%s2756_s30 + $0x138] sm:$0xff] }
  0x86   : > { %1113 = vmatpush.bf16.msra.mxu0 %v2300_v19  ;;  %v973_v44 = vshll.u32 %v2793_v35, 16  ;;  %v985_v46 = vshll.u32 %v2799_v38, 16  ;;  %v971_v49 = vshrl.u32 %v2793_v35, 16  ;;  %v978_v50 = vshll.u32 %v2807_v41, 16  ;;  %v914_v3 = vld [vmem:[%s2754_s29 + $0x20] sm:$0x11] }
  0x87   : > { %1132 = vmatpush.bf16.msra.mxu1 %v2308_v20  ;;  %v983_v54 = vshrl.u32 %v2799_v38, 16  ;;  %v990_v56 = vshll.u32 %v2816_v45, 16  ;;  %v961_v8 = vunpack.c.l.b16 %v914_v3  ;;  %v962_v9 = vunpack.c.h.b16 %v914_v3  ;;  %v2327_v11 = vld [vmem:[%s2756_s30 + $0x178] sm:$0xff]  ;;  %v2338_v12 = vld [vmem:[%s2756_s30 + $0x1b0] sm:$0xff]  ;;  %v2337_v18 = vld [vmem:[%s2756_s30 + $0x1a8] sm:$0xff] }
  0x88   : > { %1251 = vmatpush.bf16.msra.mxu2 %v2284_v21  ;;  %v975_v53 = vrot.slane %v973_v44, 1  ;;  %v987_v55 = vrot.slane %v985_v46, 1  ;;  %v980_v62 = vrot.slane %v978_v50, 1  ;;  %v2346_v13 = vld [vmem:[%s2756_s30 + $0x1f0] sm:$0xff]  ;;  %v2345_v19 = vld [vmem:[%s2756_s30 + $0x1e8] sm:$0xff]  ;;  %v994_v20 = vshrl.u32 %v2807_v41, 16 }
  0x89   : > { %1270 = vmatpush.bf16.msra.mxu3 %v2292_v22  ;;  %v992_v0 = vrot.slane %v990_v56, 1  ;;  %v967_v14 = vpack.c.b16 %v961_v8, %v961_v8  ;;  %v968_v15 = vpack.c.b16 %v962_v9, %v962_v9  ;;  %v2318_v16 = vld [vmem:[%s2756_s30 + $0x130] sm:$0xff]  ;;  %v1002_v22 = vshrl.u32 %v2816_v45, 16  ;;  %v2317_v27 = vld [vmem:[%s2756_s30 + $0x128] sm:$0xff]  ;;  %v2335_v44 = vld [vmem:[%s2756_s30 + $0x198] sm:$0xff] }
  0x8a   : > { %1114 = vmatpush.bf16.msra.mxu0 %v2299_v33  ;;  %v976_v61 = vor.u32 %v975_v53, %v971_v49  ;;  %v988_v63 = vor.u32 %v987_v55, %v983_v54  ;;  %v2326_v17 = vld [vmem:[%s2756_s30 + $0x170] sm:$0xff]  ;;  %v2325_v28 = vld [vmem:[%s2756_s30 + $0x168] sm:$0xff]  ;;  %v2336_v33 = vld [vmem:[%s2756_s30 + $0x1a0] sm:$0xff] }
  0x8b   : > { %1133 = vmatpush.bf16.msra.mxu1 %v2307_v34  ;;  %v998_v21 = vshll.u32 %v967_v14, 16  ;;  %v1006_v23 = vshll.u32 %v968_v15, 16  ;;  %v2344_v34 = vld [vmem:[%s2756_s30 + $0x1e0] sm:$0xff]  ;;  %v2343_v46 = vld [vmem:[%s2756_s30 + $0x1d8] sm:$0xff]  ;;  %v2334_v55 = vld [vmem:[%s2756_s30 + $0x190] sm:$0xff] }
  0x8c   : > { %1252 = vmatpush.bf16.msra.mxu2 %v2283_v39  ;;  %v981_v6 = vsel %vm969_vm0, %v976_v61, %v980_v62  ;;  %v993_v7 = vsel %vm969_vm0, %v988_v63, %v992_v0  ;;  %v1004_v39 = vor.u32 %v1002_v22, %v992_v0  ;;  %v2328_v49 = vld [vmem:[%s2754_s29 + $0xc] sm:$0xf]  ;;  %v2199_v50 = vld [vmem:[%s2754_s29 + $0x10] sm:$0xf0]  ;;  %v2330_v61 = vld [vmem:[%s2754_s29 + $0x1c] sm:$0xf]  ;;  %v1323_v22 = vpack.c.b16 %v957_v31, %v955_v29 }
  0x8d   : > { %1271 = vmatpush.bf16.msra.mxu3 %v2291_v40  ;;  %v1008_v40 = vrot.slane %v1006_v23, 1  ;;  %v2315_v53 = vld [vmem:[%s2756_s30 + $0x118] sm:$0xff]  ;;  %v2342_v56 = vld [vmem:[%s2756_s30 + $0x1d0] sm:$0xff]  ;;  %v2341_v3 = vld [vmem:[%s2756_s30 + $0x1c8] sm:$0xff]  ;;  %v1324_v23 = vpack.c.b16 %v958_v36, %v956_v30 }
  0x8e   : > { %1115 = vmatpush.bf16.msra.mxu0 %v2298_v42  ;;  %v2316_v42 = vld [vmem:[%s2756_s30 + $0x120] sm:$0xff]  ;;  %v2323_v54 = vld [vmem:[%s2756_s30 + $0x158] sm:$0xff]  ;;  %v2314_v63 = vld [vmem:[%s2756_s30 + $0x110] sm:$0xff] }
  0x8f   : > { %1134 = vmatpush.bf16.msra.mxu1 %v2306_v43  ;;  %v2324_v43 = vld [vmem:[%s2756_s30 + $0x160] sm:$0xff]  ;;  %v2322_v0 = vld [vmem:[%s2756_s30 + $0x150] sm:$0xff] }
  0x90   : > { %1253 = vmatpush.bf16.msra.mxu2 %v2282_v47  ;;  %v2197_v47 = vld [vmem:[%s2754_s29 + $0x8] sm:$0xf]  ;;  %v2332_v9 = vld [vmem:[%s2756_s30 + $0x180] sm:$0xff] }
  0x91   : > { %1272 = vmatpush.bf16.msra.mxu3 %v2290_v48  ;;  %v2329_v48 = vld [vmem:[%s2754_s29 + $0xc] sm:$0xf0]  ;;  %v1286_v29 = vld [vmem:[%s2754_s29 + $0x20] sm:$0xff] }
  0x92   : > { %1116 = vmatpush.bf16.msra.mxu0 %v2297_v51  ;;  %v2312_v15 = vld [vmem:[%s2756_s30 + $0x100] sm:$0xff]  ;;  %v1321_v30 = vunpack.c.l.b16 %v1286_v29  ;;  %v1322_v36 = vunpack.c.h.b16 %v1286_v29 }
  0x93   : > { %1135 = vmatpush.bf16.msra.mxu1 %v2305_v52  ;;  %v1009_v52 = vsel %vm969_vm0, %v1004_v39, %v1008_v40 }
  0x94   : > { %1254 = vmatpush.bf16.msra.mxu2 %v2281_v57  ;;  %v2205_v57 = vld [vmem:[%s2754_s29 + $0x18] sm:$0xf] }
  0x95   : > { %1273 = vmatpush.bf16.msra.mxu3 %v2289_v58  ;;  %v2331_v58 = vld [vmem:[%s2754_s29 + $0x1c] sm:$0xf0] }
  0x96   : > { %1117 = vmatpush.bf16.msra.mxu0 %v2296_v59  ;;  %v2198_v59 = vor.u32 %v2329_v48, %v2197_v47  ;;  %v1326_v47 = vpack.c.b16 %v1322_v36, %v960_v37 }
  0x97   : > { %1136 = vmatpush.bf16.msra.mxu1 %v2304_v60  ;;  %v2202_v60 = vor.u32 %v2328_v49, %v2199_v50 }
  0x98   : > { %1255 = vmatpush.bf16.msra.mxu2 %v2280_v1  ;;  %v2206_v1 = vor.u32 %v2331_v58, %v2205_v57 }
  0x99   : > { %1274 = vmatpush.bf16.msra.mxu3 %v2288_v2  ;;  %1118 = vmatmul.bf16.vlgmr.msra.gmra.mxu0 %v981_v6  ;;  %v2333_v2 = vld [vmem:[%s2756_s30 + $0x188] sm:$0xff]  ;;  %v1543_v6 = vshll.u32 %v2202_v60, 16 }
  0x9a   : > { %1137 = vmatmul.bf16.vlgmr.msra.gmra.mxu1 %v993_v7  ;;  %1427 = vmatpush.bf16.msrb.mxu0 %v2319_v10  ;;  %v1529_v7 = vshrl.u32 %v2198_v59, 16  ;;  %v1536_v8 = vshll.u32 %v2206_v1, 16  ;;  %v2340_v10 = vld [vmem:[%s2756_s30 + $0x1c0] sm:$0xff]  ;;  %v1552_v31 = vshrl.u32 %v2206_v1, 16 }
  0x9b   : > { %1256 = vmatmul.bf16.vlgmr.msra.gmra.mxu2 %v2793_v35  ;;  %1446 = vmatpush.bf16.msrb.mxu1 %v2327_v11  ;;  %v996_v35 = vor.u32 %v994_v20, %v980_v62  ;;  %v2207_v62 = vld [vmem:[%s2754_s29 + $0x20] sm:$0xf0] }
  0x9c   : > { %1668 = vmatpush.bf16.msrb.mxu2 %v2339_v4  ;;  %1275 = vmatmul.bf16.vlgmr.msra.gmra.mxu3 %v2799_v38  ;;  %v1000_v38 = vrot.slane %v998_v21, 1  ;;  %v1531_v4 = vshll.u32 %v2198_v59, 16  ;;  %v1473_v21 = vld [vmem:[%s2754_s29 + $0x28] sm:$0x11] }
  0x9d   : > { %1687 = vmatpush.bf16.msrb.mxu3 %v2347_v5  ;;  %v2210_v5 = vor.u32 %v2330_v61, %v2207_v62 }
  0x9e   : > { %1428 = vmatpush.bf16.msrb.mxu0 %v2318_v16  ;;  %v1001_v51 = vsel %vm969_vm0, %v996_v35, %v1000_v38  ;;  %v1533_v11 = vrot.slane %v1531_v4, 1  ;;  %v2320_v16 = vld [vmem:[%s2756_s30 + $0x140] sm:$0xff] }
  0x9f   : > { %1447 = vmatpush.bf16.msrb.mxu1 %v2326_v17  ;;  %v1548_v14 = vshll.u32 %v2210_v5, 16  ;;  %v1560_v39 = vshrl.u32 %v2210_v5, 16 }
  0xa0   : > { %1669 = vmatpush.bf16.msrb.mxu2 %v2338_v12  ;;  %v1541_v12 = vshrl.u32 %v2202_v60, 16  ;;  %v1534_v17 = vor.u32 %v1533_v11, %v1529_v7 }
  0xa1   : > { %1688 = vmatpush.bf16.msrb.mxu3 %v2346_v13  ;;  %v1545_v13 = vrot.slane %v1543_v6, 1  ;;  %v1550_v20 = vrot.slane %v1548_v14, 1 }
  0xa2   : > { %1429 = vmatpush.bf16.msrb.mxu0 %v2317_v27 }
  0xa3   : > { %1448 = vmatpush.bf16.msrb.mxu1 %v2325_v28 }
  0xa4   : > { %1670 = vmatpush.bf16.msrb.mxu2 %v2337_v18  ;;  %v1538_v18 = vrot.slane %v1536_v8, 1 }
  0xa5   : > { %1689 = vmatpush.bf16.msrb.mxu3 %v2345_v19  ;;  %v1546_v19 = vor.u32 %v1545_v13, %v1541_v12 }
  0xa6   : > { %1430 = vmatpush.bf16.msrb.mxu0 %v2316_v42  ;;  %v1539_v27 = vsel %vm969_vm0, %v1534_v17, %v1538_v18  ;;  %v1554_v40 = vor.u32 %v1552_v31, %v1538_v18 }
  0xa7   : > { %1449 = vmatpush.bf16.msrb.mxu1 %v2324_v43  ;;  %v1551_v28 = vsel %vm969_vm0, %v1546_v19, %v1550_v20  ;;  %v1562_v43 = vor.u32 %v1560_v39, %v1550_v20 }
  0xa8   : > { %1671 = vmatpush.bf16.msrb.mxu2 %v2336_v33  ;;  %v1520_v33 = vunpack.c.l.b16 %v1473_v21 }
  0xa9   : > { %1690 = vmatpush.bf16.msrb.mxu3 %v2344_v34  ;;  %1123 = vmatmul.bf16.gmra.mxu0 %v1001_v51  ;;  %v1521_v34 = vunpack.c.h.b16 %v1473_v21 }
  0xaa   : > { %1142 = vmatmul.bf16.gmra.mxu1 %v1009_v52  ;;  %1431 = vmatpush.bf16.msrb.mxu0 %v2315_v53  ;;  %v1526_v35 = vpack.c.b16 %v1520_v33, %v1520_v33 }
  0xab   : > { %1261 = vmatmul.bf16.gmra.mxu2 %v2807_v41  ;;  %1450 = vmatpush.bf16.msrb.mxu1 %v2323_v54  ;;  %v2313_v41 = vld [vmem:[%s2756_s30 + $0x108] sm:$0xff]  ;;  %v1527_v38 = vpack.c.b16 %v1521_v34, %v1521_v34 }
  0xac   : > { %1672 = vmatpush.bf16.msrb.mxu2 %v2335_v44  ;;  %1280 = vmatmul.bf16.gmra.mxu3 %v2816_v45  ;;  %v2321_v45 = vld [vmem:[%s2756_s30 + $0x148] sm:$0xff]  ;;  %v1556_v24 = vshll.u32 %v1526_v35, 16 }
  0xad   : > { %1691 = vmatpush.bf16.msrb.mxu3 %v2343_v46  ;;  %v1564_v25 = vshll.u32 %v1527_v38, 16  ;;  %v1325_v46 = vpack.c.b16 %v1321_v30, %v959_v32 }
  0xae   : > { %1432 = vmatpush.bf16.msrb.mxu0 %v2314_v63  ;;  %v1558_v42 = vrot.slane %v1556_v24, 1 }
  0xaf   : > { %1451 = vmatpush.bf16.msrb.mxu1 %v2322_v0  ;;  %v1566_v44 = vrot.slane %v1564_v25, 1  ;;  %v1712_v25 = vld [vmem:[#allocation2 + $0x18] sm:$0xff] }
  0xb0   : > { %1673 = vmatpush.bf16.msrb.mxu2 %v2334_v55  ;;  %v1559_v48 = vsel %vm969_vm0, %v1554_v40, %v1558_v42 }
  0xb1   : > { %1692 = vmatpush.bf16.msrb.mxu3 %v2342_v56  ;;  %v1567_v49 = vsel %vm969_vm0, %v1562_v43, %v1566_v44 }
  0xb2   : > { %1433 = vmatpush.bf16.msrb.mxu0 %v2313_v41 }
  0xb3   : > { %1452 = vmatpush.bf16.msrb.mxu1 %v2321_v45 }
  0xb4   : > { %1674 = vmatpush.bf16.msrb.mxu2 %v2333_v2 }
  0xb5   : > { %1693 = vmatpush.bf16.msrb.mxu3 %v2341_v3 }
  0xb6   : > { %1434 = vmatpush.bf16.msrb.mxu0 %v2312_v15 }
  0xb7   : > { %1453 = vmatpush.bf16.msrb.mxu1 %v2320_v16 }
  0xb8   : > { %1675 = vmatpush.bf16.msrb.mxu2 %v2332_v9 }
  0xb9   : > { %1694 = vmatpush.bf16.msrb.mxu3 %v2340_v10  ;;  %1435 = vmatmul.bf16.vlgmr.msrb.gmra.mxu0 %v1323_v22  ;;  %v1710_v10 = vld [vmem:[#allocation2 + $0x10] sm:$0xff] }
  0xba   : > { %1454 = vmatmul.bf16.vlgmr.msrb.gmra.mxu1 %v1324_v23  ;;  %v1711_v23 = vld [vmem:[#allocation2] sm:$0xff] }
  0xbb   : > { %1676 = vmatmul.bf16.vlgmr.msrb.gmra.mxu2 %v1539_v27 }
  0xbc   : > { %1695 = vmatmul.bf16.vlgmr.msrb.gmra.mxu3 %v1551_v28 }
  0xc9   : > { %1440 = vmatmul.bf16.gmra.mxu0 %v1325_v46 }
  0xca   : > { %1459 = vmatmul.bf16.gmra.mxu1 %v1326_v47 }
  0xcb   : > { %1681 = vmatmul.bf16.gmra.mxu2 %v1559_v48 }
  0xcc   : > { %1700 = vmatmul.bf16.gmra.mxu3 %v1567_v49 }
 0x116   : > { %v1119_v50 = vpop.f32.mrf.mxu0 }
 0x117   : > { %v1138_v51 = vpop.f32.mrf.mxu1 }
 0x118   : > { %v1139_v61 = vadd.f32 %v1138_v51, %v1119_v50  ;;  %v1713_v51 = vld [vmem:[#allocation2 + $0x8] sm:$0xff] }
 0x11e   : > { %v1257_v52 = vpop.f32.mrf.mxu2  ;;  %v1121_v54 = vpop.f32.mrf.mxu0 }
 0x11f   : > { %v1276_v53 = vpop.f32.mrf.mxu3  ;;  %v1140_v55 = vpop.f32.mrf.mxu1  ;;  %v1258_v2 = vadd.f32 %v1257_v52, %v1139_v61 }
 0x120   : > { %v1141_v41 = vadd.f32 %v1140_v55, %v1121_v54 }
 0x121   : > { %v1277_v4 = vadd.f32 %v1276_v53, %v1258_v2 }
 0x126   : > { %v1259_v56 = vpop.f32.mrf.mxu2  ;;  %v1124_v32 = vpop.f32.mrf.mxu0 }
 0x127   : > { %v1278_v57 = vpop.f32.mrf.mxu3  ;;  %v1143_v58 = vpop.f32.mrf.mxu1  ;;  %v1260_v11 = vadd.f32 %v1259_v56, %v1141_v41 }
 0x128   : > { %v1144_v16 = vadd.f32 %v1143_v58, %v1124_v32 }
 0x129   : > { %v1279_v15 = vadd.f32 %v1278_v57, %v1260_v11 }
 0x12e   : > { %v1262_v26 = vpop.f32.mrf.mxu2  ;;  %v1126_v59 = vpop.f32.mrf.mxu0 }
 0x12f   : > { %v1281_v37 = vpop.f32.mrf.mxu3  ;;  %v1145_v60 = vpop.f32.mrf.mxu1  ;;  %v1263_v27 = vadd.f32 %v1262_v26, %v1144_v16 }
 0x130   : > { %v1146_v31 = vadd.f32 %v1145_v60, %v1126_v59 }
 0x131   : > { %v1282_v35 = vadd.f32 %v1281_v37, %v1263_v27 }
 0x136   : > { %v1264_v62 = vpop.f32.mrf.mxu2  ;;  %v1436_v0 = vpop.f32.mrf.mxu0 }
 0x137   : > { %v1283_v63 = vpop.f32.mrf.mxu3  ;;  %v1455_v1 = vpop.f32.mrf.mxu1  ;;  %v1265_v40 = vadd.f32 %v1264_v62, %v1146_v31 }
 0x138   : > { %v1456_v3 = vadd.f32 %v1455_v1, %v1436_v0 }
 0x139   : > { %v1284_v46 = vadd.f32 %v1283_v63, %v1265_v40 }
 0x13a   : > { %v1465_v45 = vadd.f32 %v1456_v3, %v1277_v4 }
 0x13e   : > { %v1677_v5 = vpop.f32.mrf.mxu2  ;;  %v1438_v8 = vpop.f32.mrf.mxu0 }
 0x13f   : > { %v1696_v6 = vpop.f32.mrf.mxu3  ;;  %v1457_v9 = vpop.f32.mrf.mxu1 }
 0x140   : > { %v1697_v7 = vadd.f32 %v1696_v6, %v1677_v5  ;;  %v1458_v14 = vadd.f32 %v1457_v9, %v1438_v8 }
 0x142   : > { %v1706_v12 = vadd.f32 %v1697_v7, %v1465_v45  ;;  %v1466_v19 = vadd.f32 %v1458_v14, %v1279_v15 }
 0x144   : > { %v1714_v13 = vadd.f32 %v1710_v10, %v1706_v12 }
 0x146   : > { %1718 = vst [vmem:[#allocation2 + $0x10] sm:$0xff] %v1714_v13  ;;  %v1679_v17 = vpop.f32.mrf.mxu2  ;;  %v1441_v21 = vpop.f32.mrf.mxu0 }
 0x147   : > { %v1698_v18 = vpop.f32.mrf.mxu3  ;;  %v1460_v22 = vpop.f32.mrf.mxu1 }
 0x148   : > { %v1699_v20 = vadd.f32 %v1698_v18, %v1679_v17  ;;  %v1461_v34 = vadd.f32 %v1460_v22, %v1441_v21 }
 0x14a   : > { %v1707_v28 = vadd.f32 %v1699_v20, %v1466_v19  ;;  %v1467_v24 = vadd.f32 %v1461_v34, %v1282_v35 }
 0x14c   : > { %v1715_v33 = vadd.f32 %v1711_v23, %v1707_v28 }
 0x14e   : > { %1719 = vst [vmem:[#allocation2] sm:$0xff] %v1715_v33  ;;  %v1682_v38 = vpop.f32.mrf.mxu2  ;;  %v1443_v30 = vpop.f32.mrf.mxu0 }
 0x14f   : > { %v1701_v29 = vpop.f32.mrf.mxu3  ;;  %v1462_v36 = vpop.f32.mrf.mxu1 }
 0x150   : > { %v1702_v39 = vadd.f32 %v1701_v29, %v1682_v38  ;;  %v1463_v44 = vadd.f32 %v1462_v36, %v1443_v30 }
 0x152   : > { %v1708_v42 = vadd.f32 %v1702_v39, %v1467_v24  ;;  %v1468_v49 = vadd.f32 %v1463_v44, %v1284_v46 }
 0x154   : > { %v1716_v43 = vadd.f32 %v1712_v25, %v1708_v42 }
 0x156   : > { %1720 = vst [vmem:[#allocation2 + $0x18] sm:$0xff] %v1716_v43  ;;  %v1684_v47 = vpop.f32.mrf.mxu2 }
 0x157   : > { %v1703_v48 = vpop.f32.mrf.mxu3 }
 0x158   : > { %v1704_v50 = vadd.f32 %v1703_v48, %v1684_v47 }
 0x15a   : > { %v1709_v52 = vadd.f32 %v1704_v50, %v1468_v49  ;;  %1725 = sbr.rel (%p2275_p1) target bundleno = 363 (0x16b), region = 119 }
 0x15c   : > { %v1717_v53 = vadd.f32 %v1713_v51, %v1709_v52 }
 0x15e   : > { %1721 = vst [vmem:[#allocation2 + $0x8] sm:$0xff] %v1717_v53 }
 0x15f   : > { %v1726_v54 = vld [vmem:[#allocation2 + $0x10] sm:$0xff]  ;;  %v2424_v55 = vld [vmem:[%s2939_s2] ss:$0 sm:$0xff]  ;;  %v1728_v57 = vld [vmem:[#allocation2 + $0x18] sm:$0xff] }
 0x160   : > { %v1727_v56 = vld [vmem:[#allocation2] sm:$0xff]  ;;  %v1734_v58 = vadd.f32 %v2424_v55, %v1726_v54  ;;  %v1736_v37 = vadd.f32 %v2424_v55, %v1728_v57 }
 0x161   : > { %v1735_v26 = vadd.f32 %v2424_v55, %v1727_v56 }
 0x162   : > { %v1738_v60 = vmax.f32 %v1734_v58, 0.0  ;;  %v1740_v62 = vmax.f32 %v1736_v37, 0.0 }
 0x163   : > { %v1739_v61 = vmax.f32 %v1735_v26, 0.0 }
 0x164   : > { %1742 = vst [vmem:[%s2752_s24] sm:$0xff] %v1738_v60 }
 0x165   : > { %v1729_v32 = vld [vmem:[#allocation2 + $0x8] sm:$0xff]  ;;  %1743 = vst [vmem:[%s2752_s24 + $0x8] sm:$0xff] %v1739_v61 }
 0x166   : > { %v1737_v59 = vadd.f32 %v2424_v55, %v1729_v32  ;;  %1744 = vst [vmem:[%s2752_s24 + $0x10] sm:$0xff] %v1740_v62 }
 0x168   : > { %v1741_v63 = vmax.f32 %v1737_v59, 0.0 }
 0x16a   : > { %1745 = vst [vmem:[%s2752_s24 + $0x18] sm:$0xff] %v1741_v63 }
 0x16b PF: > { %s13_s20 = sadd.s32 1, %s2495_s20   ;;  %s2943_s12 = smov %s2467_s13 }
 0x16c   : > { %p10_p2 = scmp.ge.s32.totalorder %s13_s20, 6   ;;  %s2944_s13 = smov %s2583_s26 }
 0x16d   : > { %s2945_s14 = smov %s2475_s15  ;;  %s2946_s15 = smov %s2593_s4 }
 0x16e   : > { %s2947_s16 = smov %s2487_s18  ;;  %s2948_s17 = smov %s2491_s19 }
 0x16f   : > { %s2949_s18 = smov %s2952_s21  ;;  %s2950_s19 = smov %s2956_s22 }
 0x170   :  { %12 = sbr.rel (!%p10_p2) target bundleno = 5 (0x5), region = 168 }

</bundles_post_ra>
